<compile_context>
chip_gen: v7x
topology: tpu7x:2x2x1
jax: 0.10.0
libtpu: 0.0.40
codegen_flags: <defaults>
</compile_context>

<pallas_src>
import math
import functools

import jax
import jax.numpy as jnp
from jax import lax
from jax.experimental import pallas as pl
from jax.experimental.pallas import tpu as pltpu


# ---------------------------------------------------------------------------
# helpers (used identically in kernel and reference so semantics match torch)
# ---------------------------------------------------------------------------
def _softplus(x):
    # matches torch.nn.functional.softplus(beta=1, threshold=20)
    return jnp.where(x > 20.0, x, jnp.log1p(jnp.exp(jnp.minimum(x, 20.0))))


def _sigmoid(x):
    return 1.0 / (1.0 + jnp.exp(-x))


# ---------------------------------------------------------------------------
# Pallas kernel: one grid step == (one batch element, one sequence chunk)
# ---------------------------------------------------------------------------
def _mamba_kernel(
    x_ref,        # (1, chunk, d)              input
    w_in_ref,     # (d, 2*d_inner)             bf16
    conv_w_ref,   # (d_conv, d_inner)          f32 depthwise taps
    conv_b_ref,   # (1, d_inner)               f32
    w_x_ref,      # (d_inner, dt_rank + 2*n)   bf16  fused [delta | B | C]
    w_dt_ref,     # (dt_rank, d_inner)         bf16
    b_dt_ref,     # (1, d_inner)               f32
    a_neg_ref,    # (d_state, d_inner)         f32   == (-exp(A_log)).T
    D_ref,        # (1, d_inner)               f32
    w_out_ref,    # (d_inner, d)               bf16
    out_ref,      # (1, chunk, d)
    state_scr,    # (d_state, d_inner)         f32  SSM state (carried)
    hist_scr,     # (pad_rows + chunk, d_inner) f32 conv input + carried tail
    y_scr,        # (chunk, d_inner)           f32
    delta_scr,    # (chunk, d_inner)           f32
    du_scr,       # (chunk, d_inner)           f32  delta * u
    bc_scr,       # (chunk, 2*d_state)         f32  [B | C]
    *,
    chunk, d_inner, d_state, d_conv, dt_rank, tb, db, pad_rows,
):
    f32 = jnp.float32
    bf16 = jnp.bfloat16
    ci = pl.program_id(1)

    # ---- reset carried state at the start of every sequence ----------------
    @pl.when(ci == 0)
    def _():
        state_scr[...] = jnp.zeros_like(state_scr)
        hist_scr[...] = jnp.zeros_like(hist_scr)

    # ---- in_proj : (chunk, d) @ (d, 2*d_inner)  (bf16 MXU, f32 accumulate) --
    x_in = x_ref[0].astype(bf16)
    xz = jnp.dot(x_in, w_in_ref[...], preferred_element_type=f32)
    xc = xz[:, :d_inner]                 # conv branch   (chunk, d_inner) f32
    res = xz[:, d_inner:]                # gate branch

    # ---- causal depthwise conv1d (kernel=d_conv, zero left pad) -------------
    # hist rows [base, pad_rows) hold the last (d_conv-1) rows of the previous
    # chunk (zeros for chunk 0); the current chunk sits at the aligned offset
    # pad_rows.  Taps read shifted windows straight from the ref.
    base = pad_rows - (d_conv - 1)
    hist_scr[pad_rows:pad_rows + chunk, :] = xc
    conv = jnp.broadcast_to(conv_b_ref[...], (chunk, d_inner))
    for k in range(d_conv):
        conv = conv + hist_scr[base + k:base + k + chunk, :] * conv_w_ref[k:k + 1, :]
    if d_conv > 1:
        # stash this chunk's tail for the next chunk (after all tap reads)
        hist_scr[base:pad_rows, :] = xc[chunk - (d_conv - 1):, :]
    x_silu = conv * _sigmoid(conv)                       # SiLU, (chunk, d_inner)

    # ---- fused x_proj (delta_low | B | C) + dt_proj + softplus --------------
    x_dbl = jnp.dot(x_silu.astype(bf16), w_x_ref[...], preferred_element_type=f32)
    delta = _softplus(
        jnp.dot(x_dbl[:, :dt_rank].astype(bf16), w_dt_ref[...],
                preferred_element_type=f32) + b_dt_ref[...])
    delta_scr[...] = delta
    du_scr[...] = delta * x_silu
    bc_scr[...] = x_dbl[:, dt_rank:]

    a_neg = a_neg_ref[...]                               # (d_state, d_inner)

    # identity used to turn a [B_t | C_t] lane-row into a sublane-column
    # without an explicit transpose (broadcast * eye + lane-reduce).
    two_n = 2 * d_state
    ii = lax.broadcasted_iota(jnp.int32, (two_n, two_n), 0)
    jj = lax.broadcasted_iota(jnp.int32, (two_n, two_n), 1)
    eye2n = (ii == jj).astype(f32)

    n_tb = chunk // tb
    n_db = d_inner // db

    # ---- selective scan: dA / dBu / y computed on the fly -------------------
    def time_block(it, carry):
        t0 = pl.multiple_of(it * tb, tb)
        d_blk = delta_scr[pl.ds(t0, tb), :]              # (tb, d_inner)
        u_blk = du_scr[pl.ds(t0, tb), :]                 # (tb, d_inner)
        bc_blk = bc_scr[pl.ds(t0, tb), :]                # (tb, 2*d_state)
        # per-timestep [B_t | C_t] columns, shared across d_inner sub-blocks
        cols = [jnp.sum(bc_blk[t:t + 1, :] * eye2n, axis=1, keepdims=True)
                for t in range(tb)]                      # each (2*d_state, 1)
        for j in range(n_db):                            # bound vreg pressure
            lo = j * db
            a_j = a_neg[:, lo:lo + db]                   # (d_state, db)
            s = state_scr[:, lo:lo + db]                 # running state slice
            for t in range(tb):                          # statically unrolled
                dA = jnp.exp(d_blk[t:t + 1, lo:lo + db] * a_j)      # (n, db)
                dBu = u_blk[t:t + 1, lo:lo + db] * cols[t][:d_state, :]
                s = dA * s + dBu
                y_scr[pl.ds(t0 + t, 1), lo:lo + db] = jnp.sum(
                    s * cols[t][d_state:, :], axis=0, keepdims=True)
            state_scr[:, lo:lo + db] = s
        return carry

    lax.fori_loop(0, n_tb, time_block, 0)

    # ---- D skip, SiLU gate, out_proj ----------------------------------------
    y = y_scr[...] + x_silu * D_ref[...]
    y = y * (res * _sigmoid(res))
    out = jnp.dot(y.astype(bf16), w_out_ref[...], preferred_element_type=f32)
    out_ref[0] = out.astype(out_ref.dtype)


# ---------------------------------------------------------------------------
# wrapper
# ---------------------------------------------------------------------------
def mamba_block_forward(x, p, *, d_state, d_conv, chunk=None,
                        time_block=8, d_inner_block=512):
    b, l, d = x.shape
    d_inner = p["w_out"].shape[0]
    dt_rank = p["w_dt"].shape[0]

    chunk = l if chunk is None else chunk
    assert l % chunk == 0, "sequence length must be divisible by chunk"
    tb = min(time_block, chunk)
    assert chunk % tb == 0
    db = min(d_inner_block, d_inner)
    assert d_inner % db == 0
    assert chunk >= d_conv - 1
    pad_rows = max(8, ((d_conv - 1 + 7) // 8) * 8)       # aligned conv history

    # A = -exp(A_log), stored transposed so d_inner is lane-dense in-kernel.
    a_neg = (-jnp.exp(p["A_log"].astype(jnp.float32))).T   # (d_state, d_inner)

    weights = [p["w_in"], p["conv_w"], p["conv_b"], p["w_x"], p["w_dt"],
               p["b_dt"], a_neg, p["D"], p["w_out"]]

    def wspec(arr):
        nd = arr.ndim
        return pl.BlockSpec(arr.shape, lambda bi, ci, _nd=nd: (0,) * _nd)

    kernel = functools.partial(
        _mamba_kernel,
        chunk=chunk, d_inner=d_inner, d_state=d_state, d_conv=d_conv,
        dt_rank=dt_rank, tb=tb, db=db, pad_rows=pad_rows)

    grid_spec = pltpu.PrefetchScalarGridSpec(
        num_scalar_prefetch=0,
        grid=(b, l // chunk),
        in_specs=[pl.BlockSpec((1, chunk, d), lambda bi, ci: (bi, ci, 0))]
                 + [wspec(w) for w in weights],
        out_specs=pl.BlockSpec((1, chunk, d), lambda bi, ci: (bi, ci, 0)),
        scratch_shapes=[
            pltpu.VMEM((d_state, d_inner), jnp.float32),            # SSM state
            pltpu.VMEM((pad_rows + chunk, d_inner), jnp.float32),   # conv hist
            pltpu.VMEM((chunk, d_inner), jnp.float32),              # y
            pltpu.VMEM((chunk, d_inner), jnp.float32),              # delta
            pltpu.VMEM((chunk, d_inner), jnp.float32),              # delta * u
            pltpu.VMEM((chunk, 2 * d_state), jnp.float32),          # [B | C]
        ],
    )

    return pl.pallas_call(
        kernel,
        out_shape=jax.ShapeDtypeStruct((b, l, d), x.dtype),
        grid_spec=grid_spec,
        compiler_params=pltpu.CompilerParams(
            dimension_semantics=("parallel", "arbitrary"),
            vmem_limit_bytes=32 * 1024 * 1024),
    )(x, *weights)


# ---------------------------------------------------------------------------
# deterministic parameter init (shapes follow MambaBlock.__init__)
# ---------------------------------------------------------------------------
def init_params(key, dim, d_state, expand, d_conv):
    d_inner = dim * expand
    dt_rank = math.ceil(dim / 16)
    keys = jax.random.split(key, 7)

    def unif(k, shape, fan_in):
        bound = 1.0 / math.sqrt(fan_in)
        return jax.random.uniform(k, shape, jnp.float32, -bound, bound)

    params = dict(
        w_in=unif(keys[0], (dim, 2 * d_inner), dim).astype(jnp.bfloat16),
        conv_w=unif(keys[1], (d_conv, d_inner), d_conv),
        conv_b=unif(keys[2], (1, d_inner), d_conv),
        # fused x_proj weight: columns are [delta_low | B | C]
        w_x=unif(keys[3], (d_inner, dt_rank + 2 * d_state),
                 d_inner).astype(jnp.bfloat16),
        w_dt=unif(keys[4], (dt_rank, d_inner), dt_rank).astype(jnp.bfloat16),
        b_dt=unif(keys[5], (1, d_inner), dt_rank),
        A_log=jnp.log(jnp.broadcast_to(
            jnp.arange(1, d_state + 1, dtype=jnp.float32), (d_inner, d_state))),
        D=jnp.ones((1, d_inner), jnp.float32),
        w_out=unif(keys[6], (d_inner, dim), d_inner).astype(jnp.bfloat16),
    )
    return params, d_inner, dt_rank


# ---------------------------------------------------------------------------
# pure-JAX reference (mirrors the PyTorch forward; same bf16 matmul inputs)
# ---------------------------------------------------------------------------
def mamba_block_ref(x, p, *, d_state, d_conv):
    f32, bf16 = jnp.float32, jnp.bfloat16
    d_inner = p["w_out"].shape[0]
    dt_rank = p["w_dt"].shape[0]
    b, l, d = x.shape

    xz = jnp.einsum("bld,de->ble", x.astype(bf16), p["w_in"],
                    preferred_element_type=f32)
    xc, res = xz[..., :d_inner], xz[..., d_inner:]

    pad = jnp.pad(xc, ((0, 0), (d_conv - 1, 0), (0, 0)))
    conv = jnp.zeros_like(xc) + p["conv_b"][0]
    for k in range(d_conv):
        conv = conv + pad[:, k:k + l, :] * p["conv_w"][k]
    xs = conv * _sigmoid(conv)

    x_dbl = jnp.einsum("bld,de->ble", xs.astype(bf16), p["w_x"],
                       preferred_element_type=f32)
    dl = x_dbl[..., :dt_rank]
    Bm = x_dbl[..., dt_rank:dt_rank + d_state]
    Cm = x_dbl[..., dt_rank + d_state:]
    delta = _softplus(
        jnp.einsum("blr,rd->bld", dl.astype(bf16), p["w_dt"],
                   preferred_element_type=f32) + p["b_dt"][0])

    A = -jnp.exp(p["A_log"].astype(f32))                  # (d_inner, n)
    dA = jnp.exp(delta[..., None] * A[None, None])        # (b, l, d_in, n)
    dBu = (delta * xs)[..., None] * Bm[:, :, None, :]

    def step(s, inp):
        dA_t, dBu_t, C_t = inp
        s = dA_t * s + dBu_t
        y_t = jnp.sum(s * C_t[:, None, :], axis=-1)
        return s, y_t

    s0 = jnp.zeros((b, d_inner, d_state), f32)
    _, ys = lax.scan(step, s0,
                     (dA.transpose(1, 0, 2, 3), dBu.transpose(1, 0, 2, 3),
                      Cm.transpose(1, 0, 2)))
    y = ys.transpose(1, 0, 2)                             # (b, l, d_inner)
    y = y + xs * p["D"][0]
    y = y * (res * _sigmoid(res))
    return jnp.einsum("bld,de->ble", y.astype(bf16), p["w_out"],
                      preferred_element_type=f32).astype(x.dtype)


# ---------------------------------------------------------------------------
if __name__ == "__main__":
    dim, d_state, expand, d_conv = 64, 16, 2, 4
    batch, seq, chunk = 2, 32, 16          # 2 chunks -> exercises state carry

    key = jax.random.PRNGKey(0)
    kx, kp = jax.random.split(key)
    params, d_inner, dt_rank = init_params(kp, dim, d_state, expand, d_conv)
    x = jax.random.normal(kx, (batch, seq, dim), jnp.float32)

    out = mamba_block_forward(x, params, d_state=d_state, d_conv=d_conv,
                              chunk=chunk)
    out = jax.block_until_ready(out)

    ref = jax.block_until_ready(
        mamba_block_ref(x, params, d_state=d_state, d_conv=d_conv))

    assert out.shape == (batch, seq, dim)
    max_err = float(jnp.max(jnp.abs(out - ref)))
    assert jnp.allclose(out, ref, rtol=5e-3, atol=5e-3), (
        f"max abs err {max_err}")

    print("KERNEL_OK")
</pallas_src>

<mosaic_0001>
module attributes {stable_mosaic.version = 11 : i64} {
  func.func @_mamba_kernel(%arg0: i32, %arg1: i32, %arg2: memref<1x16x64xf32, #tpu.memory_space<vmem>>, %arg3: memref<64x256xbf16, #tpu.memory_space<vmem>>, %arg4: memref<4x128xf32, #tpu.memory_space<vmem>>, %arg5: memref<1x128xf32, #tpu.memory_space<vmem>>, %arg6: memref<128x36xbf16, #tpu.memory_space<vmem>>, %arg7: memref<4x128xbf16, #tpu.memory_space<vmem>>, %arg8: memref<1x128xf32, #tpu.memory_space<vmem>>, %arg9: memref<16x128xf32, #tpu.memory_space<vmem>>, %arg10: memref<1x128xf32, #tpu.memory_space<vmem>>, %arg11: memref<128x64xbf16, #tpu.memory_space<vmem>>, %arg12: memref<1x16x64xf32, #tpu.memory_space<vmem>>, %arg13: memref<16x128xf32, #tpu.memory_space<vmem>>, %arg14: memref<24x128xf32, #tpu.memory_space<vmem>>, %arg15: memref<16x128xf32, #tpu.memory_space<vmem>>, %arg16: memref<16x128xf32, #tpu.memory_space<vmem>>, %arg17: memref<16x128xf32, #tpu.memory_space<vmem>>, %arg18: memref<16x32xf32, #tpu.memory_space<vmem>>) attributes {dimension_semantics = [#tpu.dimension_semantics<parallel>, #tpu.dimension_semantics<arbitrary>], iteration_bounds = array<i64: 2, 2>, scalar_prefetch = 0 : i64, scratch_operands = 6 : i64, tpu.core_type = #tpu.core_type<tc>, window_params = [{transform_indices = @transform_0, window_bounds = array<i64: 1, 16, 64>}, {pipeline_mode = #tpu.pipeline_mode<synchronous>, transform_indices = @transform_1, window_bounds = array<i64: 64, 256>}, {pipeline_mode = #tpu.pipeline_mode<synchronous>, transform_indices = @transform_2, window_bounds = array<i64: 4, 128>}, {pipeline_mode = #tpu.pipeline_mode<synchronous>, transform_indices = @transform_3, window_bounds = array<i64: 1, 128>}, {pipeline_mode = #tpu.pipeline_mode<synchronous>, transform_indices = @transform_4, window_bounds = array<i64: 128, 36>}, {pipeline_mode = #tpu.pipeline_mode<synchronous>, transform_indices = @transform_5, window_bounds = array<i64: 4, 128>}, {pipeline_mode = #tpu.pipeline_mode<synchronous>, transform_indices = @transform_6, window_bounds = array<i64: 1, 128>}, {pipeline_mode = #tpu.pipeline_mode<synchronous>, transform_indices = @transform_7, window_bounds = array<i64: 16, 128>}, {pipeline_mode = #tpu.pipeline_mode<synchronous>, transform_indices = @transform_8, window_bounds = array<i64: 1, 128>}, {pipeline_mode = #tpu.pipeline_mode<synchronous>, transform_indices = @transform_9, window_bounds = array<i64: 128, 64>}, {transform_indices = @transform_10, window_bounds = array<i64: 1, 16, 64>}]} {
    %c0_i32 = arith.constant 0 : i32
    %0 = arith.cmpi eq, %arg1, %c0_i32 : i32
    %1 = arith.extui %0 : i1 to i32
    %c0_i32_0 = arith.constant 0 : i32
    %2 = arith.cmpi ne, %1, %c0_i32_0 : i32
    scf.if %2 {
      %cst_56 = arith.constant 0.000000e+00 : f32
      %93 = vector.broadcast %cst_56 : f32 to vector<16x128xf32>
      %c0_57 = arith.constant 0 : index
      %c0_58 = arith.constant 0 : index
      %94 = vector.load %arg13[%c0_57, %c0_58] : memref<16x128xf32, #tpu.memory_space<vmem>>, vector<16x128xf32>
      tpu.vector_store %arg13[%c0_57, %c0_58], %93 {strides = array<i32>} : memref<16x128xf32, #tpu.memory_space<vmem>>, vector<16x128xf32>,
      %cst_59 = arith.constant 0.000000e+00 : f32
      %95 = vector.broadcast %cst_59 : f32 to vector<24x128xf32>
      %c0_60 = arith.constant 0 : index
      %c0_61 = arith.constant 0 : index
      %96 = vector.load %arg14[%c0_60, %c0_61] : memref<24x128xf32, #tpu.memory_space<vmem>>, vector<24x128xf32>
      tpu.vector_store %arg14[%c0_60, %c0_61], %95 {strides = array<i32>} : memref<24x128xf32, #tpu.memory_space<vmem>>, vector<24x128xf32>,
    } else {
    }
    %c0 = arith.constant 0 : index
    %c0_1 = arith.constant 0 : index
    %c0_2 = arith.constant 0 : index
    %3 = vector.load %arg2[%c0, %c0_1, %c0_2] : memref<1x16x64xf32, #tpu.memory_space<vmem>>, vector<1x16x64xf32>
    %4 = vector.shape_cast %3 : vector<1x16x64xf32> to vector<16x64xf32>
    %5 = arith.truncf %4 : vector<16x64xf32> to vector<16x64xbf16>
    %c0_3 = arith.constant 0 : index
    %c0_4 = arith.constant 0 : index
    %6 = vector.load %arg3[%c0_3, %c0_4] : memref<64x256xbf16, #tpu.memory_space<vmem>>, vector<64x256xbf16>
    %cst = arith.constant dense<0.000000e+00> : vector<16x256xf32>
    %7 = tpu.matmul %5, %6, %cst {dimension_numbers = #tpu.dot_dimension_numbers<[1], [0], [0], [1], [0, 0, 1, 1], [], []>} : vector<16x64xbf16>, vector<64x256xbf16>, vector<16x256xf32> -> vector<16x256xf32>
    %8 = vector.extract_strided_slice %7 {offsets = [0, 0], sizes = [16, 128], strides = [1, 1]} : vector<16x256xf32> to vector<16x128xf32>
    %9 = vector.extract_strided_slice %7 {offsets = [0, 128], sizes = [16, 128], strides = [1, 1]} : vector<16x256xf32> to vector<16x128xf32>
    %c8 = arith.constant 8 : index
    %c0_5 = arith.constant 0 : index
    %10 = vector.load %arg14[%c8, %c0_5] : memref<24x128xf32, #tpu.memory_space<vmem>>, vector<16x128xf32>
    tpu.vector_store %arg14[%c8, %c0_5], %8 {strides = array<i32>} : memref<24x128xf32, #tpu.memory_space<vmem>>, vector<16x128xf32>,
    %c0_6 = arith.constant 0 : index
    %c0_7 = arith.constant 0 : index
    %11 = vector.load %arg5[%c0_6, %c0_7] : memref<1x128xf32, #tpu.memory_space<vmem>>, vector<1x128xf32>
    %12 = vector.shape_cast %11 : vector<1x128xf32> to vector<1x128xf32>
    %13 = vector.broadcast %12 : vector<1x128xf32> to vector<16x128xf32>
    %c5 = arith.constant 5 : index
    %c0_8 = arith.constant 0 : index
    %14 = vector.load %arg14[%c5, %c0_8] : memref<24x128xf32, #tpu.memory_space<vmem>>, vector<16x128xf32>
    %c0_9 = arith.constant 0 : index
    %c0_10 = arith.constant 0 : index
    %15 = vector.load %arg4[%c0_9, %c0_10] : memref<4x128xf32, #tpu.memory_space<vmem>>, vector<1x128xf32>
    %16 = vector.broadcast %15 : vector<1x128xf32> to vector<16x128xf32>
    %17 = arith.mulf %14, %16 : vector<16x128xf32>
    %18 = arith.addf %13, %17 : vector<16x128xf32>
    %c6 = arith.constant 6 : index
    %c0_11 = arith.constant 0 : index
    %19 = vector.load %arg14[%c6, %c0_11] : memref<24x128xf32, #tpu.memory_space<vmem>>, vector<16x128xf32>
    %c1 = arith.constant 1 : index
    %c0_12 = arith.constant 0 : index
    %20 = vector.load %arg4[%c1, %c0_12] : memref<4x128xf32, #tpu.memory_space<vmem>>, vector<1x128xf32>
    %21 = vector.broadcast %20 : vector<1x128xf32> to vector<16x128xf32>
    %22 = arith.mulf %19, %21 : vector<16x128xf32>
    %23 = arith.addf %18, %22 : vector<16x128xf32>
    %c7 = arith.constant 7 : index
    %c0_13 = arith.constant 0 : index
    %24 = vector.load %arg14[%c7, %c0_13] : memref<24x128xf32, #tpu.memory_space<vmem>>, vector<16x128xf32>
    %c2 = arith.constant 2 : index
    %c0_14 = arith.constant 0 : index
    %25 = vector.load %arg4[%c2, %c0_14] : memref<4x128xf32, #tpu.memory_space<vmem>>, vector<1x128xf32>
    %26 = vector.broadcast %25 : vector<1x128xf32> to vector<16x128xf32>
    %27 = arith.mulf %24, %26 : vector<16x128xf32>
    %28 = arith.addf %23, %27 : vector<16x128xf32>
    %c8_15 = arith.constant 8 : index
    %c0_16 = arith.constant 0 : index
    %29 = vector.load %arg14[%c8_15, %c0_16] : memref<24x128xf32, #tpu.memory_space<vmem>>, vector<16x128xf32>
    %c3 = arith.constant 3 : index
    %c0_17 = arith.constant 0 : index
    %30 = vector.load %arg4[%c3, %c0_17] : memref<4x128xf32, #tpu.memory_space<vmem>>, vector<1x128xf32>
    %31 = vector.broadcast %30 : vector<1x128xf32> to vector<16x128xf32>
    %32 = arith.mulf %29, %31 : vector<16x128xf32>
    %33 = arith.addf %28, %32 : vector<16x128xf32>
    %34 = vector.extract_strided_slice %8 {offsets = [13, 0], sizes = [3, 128], strides = [1, 1]} : vector<16x128xf32> to vector<3x128xf32>
    %c5_18 = arith.constant 5 : index
    %c0_19 = arith.constant 0 : index
    %35 = vector.load %arg14[%c5_18, %c0_19] : memref<24x128xf32, #tpu.memory_space<vmem>>, vector<3x128xf32>
    tpu.vector_store %arg14[%c5_18, %c0_19], %34 {strides = array<i32>} : memref<24x128xf32, #tpu.memory_space<vmem>>, vector<3x128xf32>,
    %cst_20 = arith.constant 0.000000e+00 : f32
    %36 = vector.broadcast %cst_20 : f32 to vector<16x128xf32>
    %37 = arith.subf %36, %33 : vector<16x128xf32>
    %38 = math.exp %37 : vector<16x128xf32>
    %cst_21 = arith.constant 1.000000e+00 : f32
    %39 = vector.broadcast %cst_21 : f32 to vector<16x128xf32>
    %40 = arith.addf %39, %38 : vector<16x128xf32>
    %cst_22 = arith.constant 1.000000e+00 : f32
    %41 = vector.broadcast %cst_22 : f32 to vector<16x128xf32>
    %42 = arith.divf %41, %40 : vector<16x128xf32>
    %43 = arith.mulf %33, %42 : vector<16x128xf32>
    %44 = arith.truncf %43 : vector<16x128xf32> to vector<16x128xbf16>
    %c0_23 = arith.constant 0 : index
    %c0_24 = arith.constant 0 : index
    %45 = vector.load %arg6[%c0_23, %c0_24] : memref<128x36xbf16, #tpu.memory_space<vmem>>, vector<128x36xbf16>
    %cst_25 = arith.constant dense<0.000000e+00> : vector<16x36xf32>
    %46 = tpu.matmul %44, %45, %cst_25 {dimension_numbers = #tpu.dot_dimension_numbers<[1], [0], [0], [1], [0, 0, 1, 1], [], []>} : vector<16x128xbf16>, vector<128x36xbf16>, vector<16x36xf32> -> vector<16x36xf32>
    %47 = vector.extract_strided_slice %46 {offsets = [0, 0], sizes = [16, 4], strides = [1, 1]} : vector<16x36xf32> to vector<16x4xf32>
    %48 = arith.truncf %47 : vector<16x4xf32> to vector<16x4xbf16>
    %c0_26 = arith.constant 0 : index
    %c0_27 = arith.constant 0 : index
    %49 = vector.load %arg7[%c0_26, %c0_27] : memref<4x128xbf16, #tpu.memory_space<vmem>>, vector<4x128xbf16>
    %cst_28 = arith.constant dense<0.000000e+00> : vector<16x128xf32>
    %50 = tpu.matmul %48, %49, %cst_28 {dimension_numbers = #tpu.dot_dimension_numbers<[1], [0], [0], [1], [0, 0, 1, 1], [], []>} : vector<16x4xbf16>, vector<4x128xbf16>, vector<16x128xf32> -> vector<16x128xf32>
    %c0_29 = arith.constant 0 : index
    %c0_30 = arith.constant 0 : index
    %51 = vector.load %arg8[%c0_29, %c0_30] : memref<1x128xf32, #tpu.memory_space<vmem>>, vector<1x128xf32>
    %52 = vector.broadcast %51 : vector<1x128xf32> to vector<16x128xf32>
    %53 = arith.addf %50, %52 : vector<16x128xf32>
    %cst_31 = arith.constant 2.000000e+01 : f32
    %54 = vector.broadcast %cst_31 : f32 to vector<16x128xf32>
    %55 = arith.cmpf ogt, %53, %54 : vector<16x128xf32>
    %cst_32 = arith.constant 2.000000e+01 : f32
    %56 = vector.broadcast %cst_32 : f32 to vector<16x128xf32>
    %57 = arith.minimumf %53, %56 : vector<16x128xf32>
    %58 = math.exp %57 : vector<16x128xf32>
    %59 = math.log1p %58 : vector<16x128xf32>
    %60 = arith.select %55, %53, %59 : vector<16x128xi1>, vector<16x128xf32>
    %c0_33 = arith.constant 0 : index
    %c0_34 = arith.constant 0 : index
    %61 = vector.load %arg16[%c0_33, %c0_34] : memref<16x128xf32, #tpu.memory_space<vmem>>, vector<16x128xf32>
    tpu.vector_store %arg16[%c0_33, %c0_34], %60 {strides = array<i32>} : memref<16x128xf32, #tpu.memory_space<vmem>>, vector<16x128xf32>,
    %62 = arith.mulf %60, %43 : vector<16x128xf32>
    %c0_35 = arith.constant 0 : index
    %c0_36 = arith.constant 0 : index
    %63 = vector.load %arg17[%c0_35, %c0_36] : memref<16x128xf32, #tpu.memory_space<vmem>>, vector<16x128xf32>
    tpu.vector_store %arg17[%c0_35, %c0_36], %62 {strides = array<i32>} : memref<16x128xf32, #tpu.memory_space<vmem>>, vector<16x128xf32>,
    %64 = vector.extract_strided_slice %46 {offsets = [0, 4], sizes = [16, 32], strides = [1, 1]} : vector<16x36xf32> to vector<16x32xf32>
    %c0_37 = arith.constant 0 : index
    %c0_38 = arith.constant 0 : index
    %65 = vector.load %arg18[%c0_37, %c0_38] : memref<16x32xf32, #tpu.memory_space<vmem>>, vector<16x32xf32>
    tpu.vector_store %arg18[%c0_37, %c0_38], %64 {strides = array<i32>} : memref<16x32xf32, #tpu.memory_space<vmem>>, vector<16x32xf32>,
    %c0_39 = arith.constant 0 : index
    %c0_40 = arith.constant 0 : index
    %66 = vector.load %arg9[%c0_39, %c0_40] : memref<16x128xf32, #tpu.memory_space<vmem>>, vector<16x128xf32>
    %67 = tpu.iota {dimensions = array<i32: 0>} : vector<32x32xi32>
    %68 = tpu.iota {dimensions = array<i32: 1>} : vector<32x32xi32>
    %69 = arith.cmpi eq, %67, %68 : vector<32x32xi32>
    %70 = arith.extui %69 : vector<32x32xi1> to vector<32x32xi32>
    %71 = arith.sitofp %70 : vector<32x32xi32> to vector<32x32xf32>
    %c0_i32_41 = arith.constant 0 : i32
    %c2_i32 = arith.constant 2 : i32
    %72 = arith.addi %c0_i32_41, %c2_i32 : i32
    %c1_i32 = arith.constant 1 : i32
    scf.for %arg19 = %c0_i32_41 to %72 step %c1_i32  : i32 {
      %c8_i32 = arith.constant 8 : i32
      %93 = arith.muli %arg19, %c8_i32 : i32
      %94 = tpu.assume_multiple %93, 8 : i32
      %95 = arith.index_cast %94 : i32 to index
      %c0_56 = arith.constant 0 : index
      %96 = vector.load %arg16[%95, %c0_56] : memref<16x128xf32, #tpu.memory_space<vmem>>, vector<8x128xf32>
      %97 = arith.index_cast %94 : i32 to index
      %c0_57 = arith.constant 0 : index
      %98 = vector.load %arg17[%97, %c0_57] : memref<16x128xf32, #tpu.memory_space<vmem>>, vector<8x128xf32>
      %99 = arith.index_cast %94 : i32 to index
      %c0_58 = arith.constant 0 : index
      %100 = vector.load %arg18[%99, %c0_58] : memref<16x32xf32, #tpu.memory_space<vmem>>, vector<8x32xf32>
      %101 = vector.extract_strided_slice %100 {offsets = [0, 0], sizes = [1, 32], strides = [1, 1]} : vector<8x32xf32> to vector<1x32xf32>
      %102 = vector.broadcast %101 : vector<1x32xf32> to vector<32x32xf32>
      %103 = arith.mulf %102, %71 : vector<32x32xf32>
      %cst_59 = arith.constant dense<0.000000e+00> : vector<32xf32>
      %104 = vector.multi_reduction <add>, %103, %cst_59 [1] : vector<32x32xf32> to vector<32xf32>
      %105 = vector.shape_cast %104 : vector<32xf32> to vector<32x1xf32>
      %106 = vector.extract_strided_slice %100 {offsets = [1, 0], sizes = [1, 32], strides = [1, 1]} : vector<8x32xf32> to vector<1x32xf32>
      %107 = vector.broadcast %106 : vector<1x32xf32> to vector<32x32xf32>
      %108 = arith.mulf %107, %71 : vector<32x32xf32>
      %cst_60 = arith.constant dense<0.000000e+00> : vector<32xf32>
      %109 = vector.multi_reduction <add>, %108, %cst_60 [1] : vector<32x32xf32> to vector<32xf32>
      %110 = vector.shape_cast %109 : vector<32xf32> to vector<32x1xf32>
      %111 = vector.extract_strided_slice %100 {offsets = [2, 0], sizes = [1, 32], strides = [1, 1]} : vector<8x32xf32> to vector<1x32xf32>
      %112 = vector.broadcast %111 : vector<1x32xf32> to vector<32x32xf32>
      %113 = arith.mulf %112, %71 : vector<32x32xf32>
      %cst_61 = arith.constant dense<0.000000e+00> : vector<32xf32>
      %114 = vector.multi_reduction <add>, %113, %cst_61 [1] : vector<32x32xf32> to vector<32xf32>
      %115 = vector.shape_cast %114 : vector<32xf32> to vector<32x1xf32>
      %116 = vector.extract_strided_slice %100 {offsets = [3, 0], sizes = [1, 32], strides = [1, 1]} : vector<8x32xf32> to vector<1x32xf32>
      %117 = vector.broadcast %116 : vector<1x32xf32> to vector<32x32xf32>
      %118 = arith.mulf %117, %71 : vector<32x32xf32>
      %cst_62 = arith.constant dense<0.000000e+00> : vector<32xf32>
      %119 = vector.multi_reduction <add>, %118, %cst_62 [1] : vector<32x32xf32> to vector<32xf32>
      %120 = vector.shape_cast %119 : vector<32xf32> to vector<32x1xf32>
      %121 = vector.extract_strided_slice %100 {offsets = [4, 0], sizes = [1, 32], strides = [1, 1]} : vector<8x32xf32> to vector<1x32xf32>
      %122 = vector.broadcast %121 : vector<1x32xf32> to vector<32x32xf32>
      %123 = arith.mulf %122, %71 : vector<32x32xf32>
      %cst_63 = arith.constant dense<0.000000e+00> : vector<32xf32>
      %124 = vector.multi_reduction <add>, %123, %cst_63 [1] : vector<32x32xf32> to vector<32xf32>
      %125 = vector.shape_cast %124 : vector<32xf32> to vector<32x1xf32>
      %126 = vector.extract_strided_slice %100 {offsets = [5, 0], sizes = [1, 32], strides = [1, 1]} : vector<8x32xf32> to vector<1x32xf32>
      %127 = vector.broadcast %126 : vector<1x32xf32> to vector<32x32xf32>
      %128 = arith.mulf %127, %71 : vector<32x32xf32>
      %cst_64 = arith.constant dense<0.000000e+00> : vector<32xf32>
      %129 = vector.multi_reduction <add>, %128, %cst_64 [1] : vector<32x32xf32> to vector<32xf32>
      %130 = vector.shape_cast %129 : vector<32xf32> to vector<32x1xf32>
      %131 = vector.extract_strided_slice %100 {offsets = [6, 0], sizes = [1, 32], strides = [1, 1]} : vector<8x32xf32> to vector<1x32xf32>
      %132 = vector.broadcast %131 : vector<1x32xf32> to vector<32x32xf32>
      %133 = arith.mulf %132, %71 : vector<32x32xf32>
      %cst_65 = arith.constant dense<0.000000e+00> : vector<32xf32>
      %134 = vector.multi_reduction <add>, %133, %cst_65 [1] : vector<32x32xf32> to vector<32xf32>
      %135 = vector.shape_cast %134 : vector<32xf32> to vector<32x1xf32>
      %136 = vector.extract_strided_slice %100 {offsets = [7, 0], sizes = [1, 32], strides = [1, 1]} : vector<8x32xf32> to vector<1x32xf32>
      %137 = vector.broadcast %136 : vector<1x32xf32> to vector<32x32xf32>
      %138 = arith.mulf %137, %71 : vector<32x32xf32>
      %cst_66 = arith.constant dense<0.000000e+00> : vector<32xf32>
      %139 = vector.multi_reduction <add>, %138, %cst_66 [1] : vector<32x32xf32> to vector<32xf32>
      %140 = vector.shape_cast %139 : vector<32xf32> to vector<32x1xf32>
      %c0_67 = arith.constant 0 : index
      %c0_68 = arith.constant 0 : index
      %141 = vector.load %arg13[%c0_67, %c0_68] : memref<16x128xf32, #tpu.memory_space<vmem>>, vector<16x128xf32>
      %142 = vector.extract_strided_slice %96 {offsets = [0, 0], sizes = [1, 128], strides = [1, 1]} : vector<8x128xf32> to vector<1x128xf32>
      %143 = vector.broadcast %142 : vector<1x128xf32> to vector<16x128xf32>
      %144 = arith.mulf %143, %66 : vector<16x128xf32>
      %145 = math.exp %144 : vector<16x128xf32>
      %146 = vector.extract_strided_slice %98 {offsets = [0, 0], sizes = [1, 128], strides = [1, 1]} : vector<8x128xf32> to vector<1x128xf32>
      %147 = vector.extract_strided_slice %105 {offsets = [0, 0], sizes = [16, 1], strides = [1, 1]} : vector<32x1xf32> to vector<16x1xf32>
      %148 = vector.broadcast %146 : vector<1x128xf32> to vector<16x128xf32>
      %149 = vector.broadcast %147 : vector<16x1xf32> to vector<16x128xf32>
      %150 = arith.mulf %148, %149 : vector<16x128xf32>
      %151 = arith.mulf %145, %141 : vector<16x128xf32>
      %152 = arith.addf %151, %150 : vector<16x128xf32>
      %153 = vector.extract_strided_slice %105 {offsets = [16, 0], sizes = [16, 1], strides = [1, 1]} : vector<32x1xf32> to vector<16x1xf32>
      %154 = vector.broadcast %153 : vector<16x1xf32> to vector<16x128xf32>
      %155 = arith.mulf %152, %154 : vector<16x128xf32>
      %cst_69 = arith.constant dense<0.000000e+00> : vector<128xf32>
      %156 = vector.multi_reduction <add>, %155, %cst_69 [0] : vector<16x128xf32> to vector<128xf32>
      %157 = vector.shape_cast %156 : vector<128xf32> to vector<1x128xf32>
      %c0_i32_70 = arith.constant 0 : i32
      %158 = arith.addi %94, %c0_i32_70 : i32
      %159 = arith.index_cast %158 : i32 to index
      %c0_71 = arith.constant 0 : index
      %160 = vector.load %arg15[%159, %c0_71] : memref<16x128xf32, #tpu.memory_space<vmem>>, vector<1x128xf32>
      tpu.vector_store %arg15[%159, %c0_71], %157 {strides = array<i32>} : memref<16x128xf32, #tpu.memory_space<vmem>>, vector<1x128xf32>,
      %161 = vector.extract_strided_slice %96 {offsets = [1, 0], sizes = [1, 128], strides = [1, 1]} : vector<8x128xf32> to vector<1x128xf32>
      %162 = vector.broadcast %161 : vector<1x128xf32> to vector<16x128xf32>
      %163 = arith.mulf %162, %66 : vector<16x128xf32>
      %164 = math.exp %163 : vector<16x128xf32>
      %165 = vector.extract_strided_slice %98 {offsets = [1, 0], sizes = [1, 128], strides = [1, 1]} : vector<8x128xf32> to vector<1x128xf32>
      %166 = vector.extract_strided_slice %110 {offsets = [0, 0], sizes = [16, 1], strides = [1, 1]} : vector<32x1xf32> to vector<16x1xf32>
      %167 = vector.broadcast %165 : vector<1x128xf32> to vector<16x128xf32>
      %168 = vector.broadcast %166 : vector<16x1xf32> to vector<16x128xf32>
      %169 = arith.mulf %167, %168 : vector<16x128xf32>
      %170 = arith.mulf %164, %152 : vector<16x128xf32>
      %171 = arith.addf %170, %169 : vector<16x128xf32>
      %172 = vector.extract_strided_slice %110 {offsets = [16, 0], sizes = [16, 1], strides = [1, 1]} : vector<32x1xf32> to vector<16x1xf32>
      %173 = vector.broadcast %172 : vector<16x1xf32> to vector<16x128xf32>
      %174 = arith.mulf %171, %173 : vector<16x128xf32>
      %cst_72 = arith.constant dense<0.000000e+00> : vector<128xf32>
      %175 = vector.multi_reduction <add>, %174, %cst_72 [0] : vector<16x128xf32> to vector<128xf32>
      %176 = vector.shape_cast %175 : vector<128xf32> to vector<1x128xf32>
      %c1_i32_73 = arith.constant 1 : i32
      %177 = arith.addi %94, %c1_i32_73 : i32
      %178 = arith.index_cast %177 : i32 to index
      %c0_74 = arith.constant 0 : index
      %179 = vector.load %arg15[%178, %c0_74] : memref<16x128xf32, #tpu.memory_space<vmem>>, vector<1x128xf32>
      tpu.vector_store %arg15[%178, %c0_74], %176 {strides = array<i32>} : memref<16x128xf32, #tpu.memory_space<vmem>>, vector<1x128xf32>,
      %180 = vector.extract_strided_slice %96 {offsets = [2, 0], sizes = [1, 128], strides = [1, 1]} : vector<8x128xf32> to vector<1x128xf32>
      %181 = vector.broadcast %180 : vector<1x128xf32> to vector<16x128xf32>
      %182 = arith.mulf %181, %66 : vector<16x128xf32>
      %183 = math.exp %182 : vector<16x128xf32>
      %184 = vector.extract_strided_slice %98 {offsets = [2, 0], sizes = [1, 128], strides = [1, 1]} : vector<8x128xf32> to vector<1x128xf32>
      %185 = vector.extract_strided_slice %115 {offsets = [0, 0], sizes = [16, 1], strides = [1, 1]} : vector<32x1xf32> to vector<16x1xf32>
      %186 = vector.broadcast %184 : vector<1x128xf32> to vector<16x128xf32>
      %187 = vector.broadcast %185 : vector<16x1xf32> to vector<16x128xf32>
      %188 = arith.mulf %186, %187 : vector<16x128xf32>
      %189 = arith.mulf %183, %171 : vector<16x128xf32>
      %190 = arith.addf %189, %188 : vector<16x128xf32>
      %191 = vector.extract_strided_slice %115 {offsets = [16, 0], sizes = [16, 1], strides = [1, 1]} : vector<32x1xf32> to vector<16x1xf32>
      %192 = vector.broadcast %191 : vector<16x1xf32> to vector<16x128xf32>
      %193 = arith.mulf %190, %192 : vector<16x128xf32>
      %cst_75 = arith.constant dense<0.000000e+00> : vector<128xf32>
      %194 = vector.multi_reduction <add>, %193, %cst_75 [0] : vector<16x128xf32> to vector<128xf32>
      %195 = vector.shape_cast %194 : vector<128xf32> to vector<1x128xf32>
      %c2_i32_76 = arith.constant 2 : i32
      %196 = arith.addi %94, %c2_i32_76 : i32
      %197 = arith.index_cast %196 : i32 to index
      %c0_77 = arith.constant 0 : index
      %198 = vector.load %arg15[%197, %c0_77] : memref<16x128xf32, #tpu.memory_space<vmem>>, vector<1x128xf32>
      tpu.vector_store %arg15[%197, %c0_77], %195 {strides = array<i32>} : memref<16x128xf32, #tpu.memory_space<vmem>>, vector<1x128xf32>,
      %199 = vector.extract_strided_slice %96 {offsets = [3, 0], sizes = [1, 128], strides = [1, 1]} : vector<8x128xf32> to vector<1x128xf32>
      %200 = vector.broadcast %199 : vector<1x128xf32> to vector<16x128xf32>
      %201 = arith.mulf %200, %66 : vector<16x128xf32>
      %202 = math.exp %201 : vector<16x128xf32>
      %203 = vector.extract_strided_slice %98 {offsets = [3, 0], sizes = [1, 128], strides = [1, 1]} : vector<8x128xf32> to vector<1x128xf32>
      %204 = vector.extract_strided_slice %120 {offsets = [0, 0], sizes = [16, 1], strides = [1, 1]} : vector<32x1xf32> to vector<16x1xf32>
      %205 = vector.broadcast %203 : vector<1x128xf32> to vector<16x128xf32>
      %206 = vector.broadcast %204 : vector<16x1xf32> to vector<16x128xf32>
      %207 = arith.mulf %205, %206 : vector<16x128xf32>
      %208 = arith.mulf %202, %190 : vector<16x128xf32>
      %209 = arith.addf %208, %207 : vector<16x128xf32>
      %210 = vector.extract_strided_slice %120 {offsets = [16, 0], sizes = [16, 1], strides = [1, 1]} : vector<32x1xf32> to vector<16x1xf32>
      %211 = vector.broadcast %210 : vector<16x1xf32> to vector<16x128xf32>
      %212 = arith.mulf %209, %211 : vector<16x128xf32>
      %cst_78 = arith.constant dense<0.000000e+00> : vector<128xf32>
      %213 = vector.multi_reduction <add>, %212, %cst_78 [0] : vector<16x128xf32> to vector<128xf32>
      %214 = vector.shape_cast %213 : vector<128xf32> to vector<1x128xf32>
      %c3_i32 = arith.constant 3 : i32
      %215 = arith.addi %94, %c3_i32 : i32
      %216 = arith.index_cast %215 : i32 to index
      %c0_79 = arith.constant 0 : index
      %217 = vector.load %arg15[%216, %c0_79] : memref<16x128xf32, #tpu.memory_space<vmem>>, vector<1x128xf32>
      tpu.vector_store %arg15[%216, %c0_79], %214 {strides = array<i32>} : memref<16x128xf32, #tpu.memory_space<vmem>>, vector<1x128xf32>,
      %218 = vector.extract_strided_slice %96 {offsets = [4, 0], sizes = [1, 128], strides = [1, 1]} : vector<8x128xf32> to vector<1x128xf32>
      %219 = vector.broadcast %218 : vector<1x128xf32> to vector<16x128xf32>
      %220 = arith.mulf %219, %66 : vector<16x128xf32>
      %221 = math.exp %220 : vector<16x128xf32>
      %222 = vector.extract_strided_slice %98 {offsets = [4, 0], sizes = [1, 128], strides = [1, 1]} : vector<8x128xf32> to vector<1x128xf32>
      %223 = vector.extract_strided_slice %125 {offsets = [0, 0], sizes = [16, 1], strides = [1, 1]} : vector<32x1xf32> to vector<16x1xf32>
      %224 = vector.broadcast %222 : vector<1x128xf32> to vector<16x128xf32>
      %225 = vector.broadcast %223 : vector<16x1xf32> to vector<16x128xf32>
      %226 = arith.mulf %224, %225 : vector<16x128xf32>
      %227 = arith.mulf %221, %209 : vector<16x128xf32>
      %228 = arith.addf %227, %226 : vector<16x128xf32>
      %229 = vector.extract_strided_slice %125 {offsets = [16, 0], sizes = [16, 1], strides = [1, 1]} : vector<32x1xf32> to vector<16x1xf32>
      %230 = vector.broadcast %229 : vector<16x1xf32> to vector<16x128xf32>
      %231 = arith.mulf %228, %230 : vector<16x128xf32>
      %cst_80 = arith.constant dense<0.000000e+00> : vector<128xf32>
      %232 = vector.multi_reduction <add>, %231, %cst_80 [0] : vector<16x128xf32> to vector<128xf32>
      %233 = vector.shape_cast %232 : vector<128xf32> to vector<1x128xf32>
      %c4_i32 = arith.constant 4 : i32
      %234 = arith.addi %94, %c4_i32 : i32
      %235 = arith.index_cast %234 : i32 to index
      %c0_81 = arith.constant 0 : index
      %236 = vector.load %arg15[%235, %c0_81] : memref<16x128xf32, #tpu.memory_space<vmem>>, vector<1x128xf32>
      tpu.vector_store %arg15[%235, %c0_81], %233 {strides = array<i32>} : memref<16x128xf32, #tpu.memory_space<vmem>>, vector<1x128xf32>,
      %237 = vector.extract_strided_slice %96 {offsets = [5, 0], sizes = [1, 128], strides = [1, 1]} : vector<8x128xf32> to vector<1x128xf32>
      %238 = vector.broadcast %237 : vector<1x128xf32> to vector<16x128xf32>
      %239 = arith.mulf %238, %66 : vector<16x128xf32>
      %240 = math.exp %239 : vector<16x128xf32>
      %241 = vector.extract_strided_slice %98 {offsets = [5, 0], sizes = [1, 128], strides = [1, 1]} : vector<8x128xf32> to vector<1x128xf32>
      %242 = vector.extract_strided_slice %130 {offsets = [0, 0], sizes = [16, 1], strides = [1, 1]} : vector<32x1xf32> to vector<16x1xf32>
      %243 = vector.broadcast %241 : vector<1x128xf32> to vector<16x128xf32>
      %244 = vector.broadcast %242 : vector<16x1xf32> to vector<16x128xf32>
      %245 = arith.mulf %243, %244 : vector<16x128xf32>
      %246 = arith.mulf %240, %228 : vector<16x128xf32>
      %247 = arith.addf %246, %245 : vector<16x128xf32>
      %248 = vector.extract_strided_slice %130 {offsets = [16, 0], sizes = [16, 1], strides = [1, 1]} : vector<32x1xf32> to vector<16x1xf32>
      %249 = vector.broadcast %248 : vector<16x1xf32> to vector<16x128xf32>
      %250 = arith.mulf %247, %249 : vector<16x128xf32>
      %cst_82 = arith.constant dense<0.000000e+00> : vector<128xf32>
      %251 = vector.multi_reduction <add>, %250, %cst_82 [0] : vector<16x128xf32> to vector<128xf32>
      %252 = vector.shape_cast %251 : vector<128xf32> to vector<1x128xf32>
      %c5_i32 = arith.constant 5 : i32
      %253 = arith.addi %94, %c5_i32 : i32
      %254 = arith.index_cast %253 : i32 to index
      %c0_83 = arith.constant 0 : index
      %255 = vector.load %arg15[%254, %c0_83] : memref<16x128xf32, #tpu.memory_space<vmem>>, vector<1x128xf32>
      tpu.vector_store %arg15[%254, %c0_83], %252 {strides = array<i32>} : memref<16x128xf32, #tpu.memory_space<vmem>>, vector<1x128xf32>,
      %256 = vector.extract_strided_slice %96 {offsets = [6, 0], sizes = [1, 128], strides = [1, 1]} : vector<8x128xf32> to vector<1x128xf32>
      %257 = vector.broadcast %256 : vector<1x128xf32> to vector<16x128xf32>
      %258 = arith.mulf %257, %66 : vector<16x128xf32>
      %259 = math.exp %258 : vector<16x128xf32>
      %260 = vector.extract_strided_slice %98 {offsets = [6, 0], sizes = [1, 128], strides = [1, 1]} : vector<8x128xf32> to vector<1x128xf32>
      %261 = vector.extract_strided_slice %135 {offsets = [0, 0], sizes = [16, 1], strides = [1, 1]} : vector<32x1xf32> to vector<16x1xf32>
      %262 = vector.broadcast %260 : vector<1x128xf32> to vector<16x128xf32>
      %263 = vector.broadcast %261 : vector<16x1xf32> to vector<16x128xf32>
      %264 = arith.mulf %262, %263 : vector<16x128xf32>
      %265 = arith.mulf %259, %247 : vector<16x128xf32>
      %266 = arith.addf %265, %264 : vector<16x128xf32>
      %267 = vector.extract_strided_slice %135 {offsets = [16, 0], sizes = [16, 1], strides = [1, 1]} : vector<32x1xf32> to vector<16x1xf32>
      %268 = vector.broadcast %267 : vector<16x1xf32> to vector<16x128xf32>
      %269 = arith.mulf %266, %268 : vector<16x128xf32>
      %cst_84 = arith.constant dense<0.000000e+00> : vector<128xf32>
      %270 = vector.multi_reduction <add>, %269, %cst_84 [0] : vector<16x128xf32> to vector<128xf32>
      %271 = vector.shape_cast %270 : vector<128xf32> to vector<1x128xf32>
      %c6_i32 = arith.constant 6 : i32
      %272 = arith.addi %94, %c6_i32 : i32
      %273 = arith.index_cast %272 : i32 to index
      %c0_85 = arith.constant 0 : index
      %274 = vector.load %arg15[%273, %c0_85] : memref<16x128xf32, #tpu.memory_space<vmem>>, vector<1x128xf32>
      tpu.vector_store %arg15[%273, %c0_85], %271 {strides = array<i32>} : memref<16x128xf32, #tpu.memory_space<vmem>>, vector<1x128xf32>,
      %275 = vector.extract_strided_slice %96 {offsets = [7, 0], sizes = [1, 128], strides = [1, 1]} : vector<8x128xf32> to vector<1x128xf32>
      %276 = vector.broadcast %275 : vector<1x128xf32> to vector<16x128xf32>
      %277 = arith.mulf %276, %66 : vector<16x128xf32>
      %278 = math.exp %277 : vector<16x128xf32>
      %279 = vector.extract_strided_slice %98 {offsets = [7, 0], sizes = [1, 128], strides = [1, 1]} : vector<8x128xf32> to vector<1x128xf32>
      %280 = vector.extract_strided_slice %140 {offsets = [0, 0], sizes = [16, 1], strides = [1, 1]} : vector<32x1xf32> to vector<16x1xf32>
      %281 = vector.broadcast %279 : vector<1x128xf32> to vector<16x128xf32>
      %282 = vector.broadcast %280 : vector<16x1xf32> to vector<16x128xf32>
      %283 = arith.mulf %281, %282 : vector<16x128xf32>
      %284 = arith.mulf %278, %266 : vector<16x128xf32>
      %285 = arith.addf %284, %283 : vector<16x128xf32>
      %286 = vector.extract_strided_slice %140 {offsets = [16, 0], sizes = [16, 1], strides = [1, 1]} : vector<32x1xf32> to vector<16x1xf32>
      %287 = vector.broadcast %286 : vector<16x1xf32> to vector<16x128xf32>
      %288 = arith.mulf %285, %287 : vector<16x128xf32>
      %cst_86 = arith.constant dense<0.000000e+00> : vector<128xf32>
      %289 = vector.multi_reduction <add>, %288, %cst_86 [0] : vector<16x128xf32> to vector<128xf32>
      %290 = vector.shape_cast %289 : vector<128xf32> to vector<1x128xf32>
      %c7_i32 = arith.constant 7 : i32
      %291 = arith.addi %94, %c7_i32 : i32
      %292 = arith.index_cast %291 : i32 to index
      %c0_87 = arith.constant 0 : index
      %293 = vector.load %arg15[%292, %c0_87] : memref<16x128xf32, #tpu.memory_space<vmem>>, vector<1x128xf32>
      tpu.vector_store %arg15[%292, %c0_87], %290 {strides = array<i32>} : memref<16x128xf32, #tpu.memory_space<vmem>>, vector<1x128xf32>,
      %c0_88 = arith.constant 0 : index
      %c0_89 = arith.constant 0 : index
      %294 = vector.load %arg13[%c0_88, %c0_89] : memref<16x128xf32, #tpu.memory_space<vmem>>, vector<16x128xf32>
      tpu.vector_store %arg13[%c0_88, %c0_89], %285 {strides = array<i32>} : memref<16x128xf32, #tpu.memory_space<vmem>>, vector<16x128xf32>,
    }
    %c2_i32_42 = arith.constant 2 : i32
    %c0_43 = arith.constant 0 : index
    %c0_44 = arith.constant 0 : index
    %73 = vector.load %arg15[%c0_43, %c0_44] : memref<16x128xf32, #tpu.memory_space<vmem>>, vector<16x128xf32>
    %c0_45 = arith.constant 0 : index
    %c0_46 = arith.constant 0 : index
    %74 = vector.load %arg10[%c0_45, %c0_46] : memref<1x128xf32, #tpu.memory_space<vmem>>, vector<1x128xf32>
    %75 = vector.broadcast %74 : vector<1x128xf32> to vector<16x128xf32>
    %76 = arith.mulf %43, %75 : vector<16x128xf32>
    %77 = arith.addf %73, %76 : vector<16x128xf32>
    %cst_47 = arith.constant 0.000000e+00 : f32
    %78 = vector.broadcast %cst_47 : f32 to vector<16x128xf32>
    %79 = arith.subf %78, %9 : vector<16x128xf32>
    %80 = math.exp %79 : vector<16x128xf32>
    %cst_48 = arith.constant 1.000000e+00 : f32
    %81 = vector.broadcast %cst_48 : f32 to vector<16x128xf32>
    %82 = arith.addf %81, %80 : vector<16x128xf32>
    %cst_49 = arith.constant 1.000000e+00 : f32
    %83 = vector.broadcast %cst_49 : f32 to vector<16x128xf32>
    %84 = arith.divf %83, %82 : vector<16x128xf32>
    %85 = arith.mulf %9, %84 : vector<16x128xf32>
    %86 = arith.mulf %77, %85 : vector<16x128xf32>
    %87 = arith.truncf %86 : vector<16x128xf32> to vector<16x128xbf16>
    %c0_50 = arith.constant 0 : index
    %c0_51 = arith.constant 0 : index
    %88 = vector.load %arg11[%c0_50, %c0_51] : memref<128x64xbf16, #tpu.memory_space<vmem>>, vector<128x64xbf16>
    %cst_52 = arith.constant dense<0.000000e+00> : vector<16x64xf32>
    %89 = tpu.matmul %87, %88, %cst_52 {dimension_numbers = #tpu.dot_dimension_numbers<[1], [0], [0], [1], [0, 0, 1, 1], [], []>} : vector<16x128xbf16>, vector<128x64xbf16>, vector<16x64xf32> -> vector<16x64xf32>
    %c0_53 = arith.constant 0 : index
    %c0_54 = arith.constant 0 : index
    %c0_55 = arith.constant 0 : index
    %90 = vector.load %arg12[%c0_53, %c0_54, %c0_55] : memref<1x16x64xf32, #tpu.memory_space<vmem>>, vector<1x16x64xf32>
    %91 = vector.shape_cast %90 : vector<1x16x64xf32> to vector<16x64xf32>
    %92 = vector.shape_cast %89 : vector<16x64xf32> to vector<1x16x64xf32>
    tpu.vector_store %arg12[%c0_53, %c0_54, %c0_55], %92 {strides = array<i32>} : memref<1x16x64xf32, #tpu.memory_space<vmem>>, vector<1x16x64xf32>,
    return
  }
  func.func @transform_0(%arg0: i32, %arg1: i32) -> (i32, i32, i32) {
    %c0_i32 = arith.constant 0 : i32
    %c0_i32_0 = arith.constant 0 : i32
    return %arg0, %arg1, %c0_i32 : i32, i32, i32
  }
  func.func @transform_1(%arg0: i32, %arg1: i32) -> (i32, i32) {
    %c0_i32 = arith.constant 0 : i32
    %c0_i32_0 = arith.constant 0 : i32
    %c0_i32_1 = arith.constant 0 : i32
    return %c0_i32, %c0_i32_0 : i32, i32
  }
  func.func @transform_2(%arg0: i32, %arg1: i32) -> (i32, i32) {
    %c0_i32 = arith.constant 0 : i32
    %c0_i32_0 = arith.constant 0 : i32
    %c0_i32_1 = arith.constant 0 : i32
    return %c0_i32, %c0_i32_0 : i32, i32
  }
  func.func @transform_3(%arg0: i32, %arg1: i32) -> (i32, i32) {
    %c0_i32 = arith.constant 0 : i32
    %c0_i32_0 = arith.constant 0 : i32
    %c0_i32_1 = arith.constant 0 : i32
    return %c0_i32, %c0_i32_0 : i32, i32
  }
  func.func @transform_4(%arg0: i32, %arg1: i32) -> (i32, i32) {
    %c0_i32 = arith.constant 0 : i32
    %c0_i32_0 = arith.constant 0 : i32
    %c0_i32_1 = arith.constant 0 : i32
    return %c0_i32, %c0_i32_0 : i32, i32
  }
  func.func @transform_5(%arg0: i32, %arg1: i32) -> (i32, i32) {
    %c0_i32 = arith.constant 0 : i32
    %c0_i32_0 = arith.constant 0 : i32
    %c0_i32_1 = arith.constant 0 : i32
    return %c0_i32, %c0_i32_0 : i32, i32
  }
  func.func @transform_6(%arg0: i32, %arg1: i32) -> (i32, i32) {
    %c0_i32 = arith.constant 0 : i32
    %c0_i32_0 = arith.constant 0 : i32
    %c0_i32_1 = arith.constant 0 : i32
    return %c0_i32, %c0_i32_0 : i32, i32
  }
  func.func @transform_7(%arg0: i32, %arg1: i32) -> (i32, i32) {
    %c0_i32 = arith.constant 0 : i32
    %c0_i32_0 = arith.constant 0 : i32
    %c0_i32_1 = arith.constant 0 : i32
    return %c0_i32, %c0_i32_0 : i32, i32
  }
  func.func @transform_8(%arg0: i32, %arg1: i32) -> (i32, i32) {
    %c0_i32 = arith.constant 0 : i32
    %c0_i32_0 = arith.constant 0 : i32
    %c0_i32_1 = arith.constant 0 : i32
    return %c0_i32, %c0_i32_0 : i32, i32
  }
  func.func @transform_9(%arg0: i32, %arg1: i32) -> (i32, i32) {
    %c0_i32 = arith.constant 0 : i32
    %c0_i32_0 = arith.constant 0 : i32
    %c0_i32_1 = arith.constant 0 : i32
    return %c0_i32, %c0_i32_0 : i32, i32
  }
  func.func @transform_10(%arg0: i32, %arg1: i32) -> (i32, i32, i32) {
    %c0_i32 = arith.constant 0 : i32
    %c0_i32_0 = arith.constant 0 : i32
    return %arg0, %arg1, %c0_i32 : i32, i32, i32
  }
}

</mosaic_0001>

<bundles_post_ra>
// kernel: tpu_custom_call.1
= control target key start
LH: loop header
LB: loop body
LE: loop exit
PB: predicated region body
PF: predicated region fallthrough
CT: control target
= control target key end

     0   :  { %15 = vsyncpa [#allocation9], 0  ;;  %s2609_s0 = inlined_call_operand.vmem [shape: f32[2,32,64], index: 0, kind: input, shape index: {}]   ;;  %s2610_s1 = inlined_call_operand.vmem [shape: bf16[64,256], index: 1, kind: input, shape index: {}]   ;;  %s2611_s2 = inlined_call_operand.vmem [shape: f32[4,128], index: 2, kind: input, shape index: {}]   ;;  %s2612_s3 = inlined_call_operand.vmem [shape: f32[1,128], index: 3, kind: input, shape index: {}]   ;;  %s2613_s4 = inlined_call_operand.vmem [shape: bf16[128,36], index: 4, kind: input, shape index: {}]   ;;  %s2614_s5 = inlined_call_operand.vmem [shape: bf16[4,128], index: 5, kind: input, shape index: {}]   ;;  %s2615_s6 = inlined_call_operand.vmem [shape: f32[1,128], index: 6, kind: input, shape index: {}]   ;;  %s2616_s7 = inlined_call_operand.vmem [shape: f32[16,128], index: 7, kind: input, shape index: {}]   ;;  %s2617_s8 = inlined_call_operand.vmem [shape: f32[1,128], index: 8, kind: input, shape index: {}]   ;;  %s2618_s9 = inlined_call_operand.vmem [shape: bf16[128,64], index: 9, kind: input, shape index: {}]   ;;  %s2619_s10 = inlined_call_operand.hbm [shape: f32[2,32,64], index: 10, kind: output, shape index: {}]  }
   0x1   :  { %17 = vsyncpa [#allocation9 + $0x1], 0  ;;  %s1967_s13 = smov 0   ;;  %s1969_s14 = smov 0  }
   0x2   :  { %s1971_s15 = smov 0   ;;  %s1973_s16 = smov 0  }
   0x3   :  { %s1975_s17 = smov 0   ;;  %s1977_s18 = smov 0  }
   0x4   :  { %s1979_s19 = smov 0   ;;  %s1981_s20 = smov 0  }
   0x5 LB: > { %2625 = sst [smem:[#allocation11_spill]] %s1890_s18  ;;  %s1496_s21 = sadd.s32 4294967295, %s1898_s20   ;;  %s1898_s20 = sphi %s1981_s20, %s23_s20   ;;  %s1894_s19 = sphi %s1979_s19, %s2637_s19   ;;  %s1890_s18 = sphi %s1977_s18, %s2636_s18   ;;  %s1886_s17 = sphi %s1975_s17, %s2635_s17   ;;  %s1882_s16 = sphi %s1973_s16, %s2634_s16   ;;  %s1878_s15 = sphi %s1971_s15, %s2640_s15   ;;  %s1874_s14 = sphi %s1969_s14, %s2639_s14   ;;  %s1870_s13 = sphi %s1967_s13, %s2638_s13  }
   0x6   : > { %2626 = sst [smem:[#allocation12_spill]] %s1894_s19  ;;  %s1497_s22 = sadd.s32 4294967294, %s1898_s20  }
   0x7   : > { %s32_s23 = sadd.s32 1, %s1890_s18  ;;  %s35_s24 = sadd.s32 1, %s1894_s19 }
   0x8   : > { %p33_p0 = scmp.ge.s32.totalorder %s32_s23, 2  ;;  %p271_p1 = scmp.ne.s32.totalorder %s1878_s15, %s1874_s14 }
   0x9   : > { %p272_p2 = scmp.eq.s32.totalorder %s1496_s21, 3  ;;  %p277_p5 = scmp.ne.s32.totalorder %s1874_s14, %s1870_s13 }
   0xa   : > { %s2642_s23 = smov (%p33_p0, %s32_s23), 0  ;;  %s2644_s24 = smov (!%p33_p0, %s35_s24), %s1894_s19 }
   0xb   : > { %2627 = sst [smem:[#allocation13_spill]] %s2642_s23  ;;  %s257_s25 = ssub.s32 %s1890_s18, %s2642_s23 }
   0xc   : > { %p2018_p3 = por %p272_p2, %p271_p1  ;;  %p37_p4 = scmp.ge.s32.totalorder %s2644_s24, 2 }
   0xd   : > { %p278_p6 = scmp.eq.s32.totalorder %s1497_s22, 3  ;;  %p1500_p7 = scmp.ge.s32.totalorder %s1898_s20, 1 }
   0xe   : > { %s2646_s24 = smov (%p37_p4, %s2644_s24), 0  ;;  %p336_p9 = scmp.lt.s32.totalorder %s1898_s20, 5 }
   0xf   : > { %2629 = sst [smem:[#allocation14_spill]] %s2646_s24  ;;  %p2027_p8 = por %p278_p6, %p277_p5 }
  0x10   : > { %s256_s28 = ssub.s32 %s1894_s19, %s2646_s24  ;;  %s261_s29 = sadd.s32 1, %s1878_s15 }
  0x11   : > { %s258_s30 = sor.u32 %s257_s25, %s256_s28  ;;  %p337_p10 = pnand %p1500_p7, %p336_p9 }
  0x12   : > { %p259_p11 = scmp.eq.s32.totalorder %s258_s30, 0  ;;  %s2624_s12 = sand.u32 (!%p337_p10), 1, %s1874_s14  }
  0x13   : > { %340 = sbr.rel (%p337_p10) target bundleno = 1255 (0x4e7), region = 60  ;;  %s2040_s21 = sshll.u32 (!%p337_p10), %s1882_s16, 1 }
  0x14   : > { %s2036_s11 = scalar_select %p259_p11, %s1878_s15, %s261_s29  }
  0x15   : > { %s1501_s22 = sshll.u32 (!%p337_p10), %s2624_s12, 4  ;;  %p379_p12 = scmp.lt.s32.totalorder (!%p337_p10), %s1886_s17, 1 }
  0x16   : > { %2631 = sst [smem:[#allocation15_spill]] %s2036_s11  ;;  %p381_p13 = scmp.lt.s32.totalorder (!%p337_p10), %s2040_s21, 3 }
  0x17   : > { %s2051_s11 = scalar_lea.vmem (!%p337_p10), [#allocation8], %s1501_s22  ;;  %p1505_p0 = scmp.ne.s32.totalorder (!%p337_p10), %s1882_s16, 0 }
  0x1a   : > { %s380_s25 = scalar_select %p379_p12, %s1886_s17, 1 }
  0x1b   : > { %s382_s28 = scalar_select %p381_p13, %s2040_s21, 3 }
  0x1c   : > { %s1503_s30 = sshll.u32 %s380_s25, 2  ;;  %393 = sbr.rel (%p1505_p0) target bundleno = 35 (0x23), region = 64  ;;  %v1904_v0 = vmov (!%p1505_p0), 0.0  }
  0x1d   : > { %s384_s29 = sadd.s32 %s1503_s30, %s382_s28  ;;  %394 = vst [vmem:[#allocation2] sm:$0xff] (!%p1505_p0), %v1904_v0  ;;  %395 = vst [vmem:[#allocation2 + $0x8] sm:$0xff] (!%p1505_p0), %v1904_v0 }
  0x1e   : > { %s1504_s24 = sshll.u32 %s384_s29, 3  ;;  %396 = vst [vmem:[#allocation3] sm:$0xff] (!%p1505_p0), %v1904_v0  ;;  %397 = vst [vmem:[#allocation3 + $0x8] sm:$0xff] (!%p1505_p0), %v1904_v0 }
  0x1f   : > { %s386_s18 = scalar_lea.vmem %s2609_s0, %s1504_s24  ;;  %398 = vst [vmem:[#allocation3 + $0x10] sm:$0xff] (!%p1505_p0), %v1904_v0 }
  0x23 PF: > { %v1716_v1 = vld [vmem:[%s2610_s1 + $0x4] ss:$8 sps:$4 sm:$0xff]   ;;  %v1718_v2 = vld [vmem:[%s2610_s1] ss:$8 sps:$4 sm:$0xff]   ;;  %v1905_v3 = vmov 0   ;;  %vm450_vm0 = vcmask 523264   ;;  %v776_v13 = vlaneseq }
  0x24   : > { %486 = vmatprep.mubr.bf16.mxu1 %v1905_v3  ;;  %454 = vmatprep.subr.bf16.mxu1 %v1716_v1  ;;  %v1719_v4 = vld [vmem:[%s2610_s1 + $0x14] ss:$8 sps:$4 sm:$0xff]   ;;  %v1721_v5 = vld [vmem:[%s2610_s1 + $0x10] ss:$8 sps:$4 sm:$0xff]   ;;  %v1722_v6 = vld [vmem:[%s2610_s1 + $0x24] ss:$8 sps:$4 sm:$0xff]  }
  0x25   : > { %455 = vmatpush1.bf16.msra.mxu1 %v1718_v2  ;;  %v1724_v7 = vld [vmem:[%s2610_s1 + $0x20] ss:$8 sps:$4 sm:$0xff]   ;;  %v1725_v8 = vld [vmem:[%s2610_s1 + $0x34] ss:$8 sps:$4 sm:$0xff]   ;;  %v1727_v9 = vld [vmem:[%s2610_s1 + $0x30] ss:$8 sps:$4 sm:$0xff]  }
  0x26   : > { %456 = vmatprep.subr.bf16.mxu1 %v1719_v4  ;;  %v399_v10 = vld [vmem:[%s386_s18] sm:$0xff]  ;;  %v400_v11 = vld [vmem:[%s386_s18 + $0x8] sm:$0xff]  ;;  %v1906_v15 = vmov 0.0   ;;  %vm1907_vm1 = vmmov 0   ;;  %v2085_v16 = vshrl.u32 %v776_v13, 7  ;;  %v782_v17 = vand.u32 127, %v776_v13 }
  0x27   : > { %v401_v12 = vpack.c.bf16 %v400_v11, %v399_v10  ;;  %v1728_v14 = vld [vmem:[%s2613_s4] sm:$0xff]   ;;  %v1729_v18 = vld [vmem:[%s2613_s4 + $0x8] sm:$0xff]   ;;  %1604 = vmatprep.subr.bf16.mxu0 %v1906_v15  ;;  %1606 = vmatprep.mubr.msk.bf16.mxu0 %vm1907_vm1, %v1906_v15  ;;  %v1730_v23 = vld [vmem:[%s2613_s4 + $0x10] sm:$0xff]   ;;  %vm684_vm6 = vcmask 1041408   ;;  %s1908_s25 = smov 124   ;;  %vm680_vm7 = vcmask 31744  }
  0x28   : > { %v778_v19 = vadd.s32 8, %v2085_v16  ;;  %v779_v20 = vadd.s32 16, %v2085_v16  ;;  %v780_v21 = vadd.s32 24, %v2085_v16  ;;  %vm783_vm2 = vcmp.eq.s32.totalorder %v2085_v16, %v782_v17  ;;  %v1731_v27 = vld [vmem:[%s2613_s4 + $0x18] sm:$0xff]   ;;  %v1732_v28 = vld [vmem:[%s2613_s4 + $0x20] sm:$0xff]   ;;  %v1733_v29 = vld [vmem:[%s2613_s4 + $0x28] sm:$0xff]  }
  0x29   : > { %457 = vmatpush1.bf16.msra.mxu1 %v1721_v5  ;;  %v2099_v22 = vsel %vm783_vm2, 1.0, %v1906_v15  ;;  %v1734_v30 = vld [vmem:[%s2613_s4 + $0x30] sm:$0xff]   ;;  %v1735_v31 = vld [vmem:[%s2613_s4 + $0x38] sm:$0xff]   ;;  %v1516_v36 = vld [vmem:[%s2611_s2] ss:$0 sm:$0xff]  ;;  %vm771_vm8 = vcmask 261120  }
  0x2a   : > { %458 = vmatprep.subr.bf16.mxu1 %v1722_v6  ;;  %vm784_vm3 = vcmp.eq.s32.totalorder %v778_v19, %v782_v17  ;;  %vm785_vm4 = vcmp.eq.s32.totalorder %v779_v20, %v782_v17  ;;  %vm786_vm5 = vcmp.eq.s32.totalorder %v780_v21, %v782_v17  ;;  %v1515_v37 = vld [vmem:[%s2612_s3] ss:$0 sm:$0xff]  ;;  %v1517_v38 = vld [vmem:[%s2611_s2 + $0x1] ss:$0 sm:$0xff]  ;;  %v1518_v45 = vld [vmem:[%s2611_s2 + $0x2] ss:$0 sm:$0xff] }
  0x2b   : > { %v2105_v24 = vsel %vm784_vm3, 1.0, %v1906_v15  ;;  %v2108_v25 = vsel %vm785_vm4, 1.0, %v1906_v15  ;;  %v2111_v26 = vsel %vm786_vm5, 1.0, %v1906_v15  ;;  %v1519_v50 = vld [vmem:[%s2611_s2 + $0x3] ss:$0 sm:$0xff]  ;;  %s2179_s18 = smov 0  }
  0x2d   : > { %459 = vmatpush1.bf16.msra.mxu1 %v1724_v7 }
  0x2e   : > { %460 = vmatprep.subr.bf16.mxu1 %v1725_v8 }
  0x31   : > { %461 = vmatpush1.bf16.msra.mxu1 %v1727_v9 }
  0x32   : > { %1584 = vmatprep.subr.bf16.mxu1 %v1906_v15 }
  0x34   : > { %1514 = vmatmul.mubr.msk.bf16.vlgmr.msra.gmra.mrb[0].mxu1 %vm450_vm0, %v401_v12  ;;  %v672_v12 = vld [vmem:[%s2614_s5] sm:$0x3] }
  0x35   : > { %1600 = vmatprep.mubr.msk.bf16.mxu1 %vm1907_vm1, %v1906_v15  ;;  %1585 = vmatpush3.bf16.msra.mxu1 %v1728_v14  ;;  %v686_v13 = vsel %vm684_vm6, %v672_v12, 0 }
  0x36   : > { %1586 = vmatprep.subr.bf16.mxu1 %v1906_v15  ;;  %1605 = vmatpush3.bf16.msra.mxu0 %v686_v13 }
  0x39   : > { %1587 = vmatpush3.bf16.msra.mxu1 %v1729_v18 }
  0x3a   : > { %1588 = vmatprep.subr.bf16.mxu1 %v1906_v15 }
  0x3d   : > { %1589 = vmatpush3.bf16.msra.mxu1 %v1730_v23 }
  0x3e   : > { %1590 = vmatprep.subr.bf16.mxu1 %v1906_v15 }
  0x41   : > { %1591 = vmatpush3.bf16.msra.mxu1 %v1731_v27  ;;  %v2167_v27 = vld [vmem:[%s2616_s7] sm:$0xff] }
  0x42   : > { %1592 = vmatprep.subr.bf16.mxu1 %v1906_v15 }
  0x45   : > { %1593 = vmatpush3.bf16.msra.mxu1 %v1732_v28  ;;  %v2172_v28 = vld [vmem:[%s2616_s7 + $0x8] sm:$0xff] }
  0x46   : > { %1594 = vmatprep.subr.bf16.mxu1 %v1906_v15 }
  0x49   : > { %1595 = vmatpush3.bf16.msra.mxu1 %v1733_v29  ;;  %v1528_v29 = vld [vmem:[%s2615_s6] ss:$0 sm:$0xff] }
  0x4a   : > { %1596 = vmatprep.subr.bf16.mxu1 %v1906_v15 }
  0x4d   : > { %1597 = vmatpush3.bf16.msra.mxu1 %v1734_v30 }
  0x4e   : > { %1598 = vmatprep.subr.bf16.mxu1 %v1906_v15 }
  0x51   : > { %1599 = vmatpush3.bf16.msra.mxu1 %v1735_v31 }
 0x107   : > { %v488_v32 = vpop.f32.mrb[0].mxu1 }
 0x108   : > { %497 = vst [vmem:[#allocation3 + $0x8] sm:$0xff] %v488_v32  ;;  %v2134_v33 = vpop.f32.mrb[1].mxu1  ;;  %v546_v58 = vmul.f32 %v1519_v50, %v488_v32 }
 0x109   : > { %v492_v34 = vpop.f32.mrb[2].mxu1 }
 0x10a   : > { %498 = vst [vmem:[#allocation3 + $0x10] sm:$0xff] %v492_v34  ;;  %v2136_v35 = vpop.f32.mrb[3].mxu1  ;;  %v547_v60 = vmul.f32 %v1519_v50, %v492_v34 }
 0x10f   : > { %v506_v39 = vld [vmem:[#allocation3 + $0x5] sm:$0xff] }
 0x110   : > { %v517_v40 = vld [vmem:[#allocation3 + $0x6] sm:$0xff]  ;;  %v513_v42 = vmul.f32 %v1516_v36, %v506_v39 }
 0x111   : > { %v528_v41 = vld [vmem:[#allocation3 + $0x7] sm:$0xff]  ;;  %v524_v48 = vmul.f32 %v1517_v38, %v517_v40  ;;  %v529_v49 = vld [vmem:[#allocation3 + $0xf] sm:$0xff] }
 0x112   : > { %550 = vst [vmem:[#allocation3] sm:$0xe0] %v492_v34  ;;  %v507_v43 = vld [vmem:[#allocation3 + $0xd] sm:$0xff]  ;;  %v515_v47 = vadd.f32 %v1515_v37, %v513_v42  ;;  %v535_v54 = vmul.f32 %v1518_v45, %v528_v41  ;;  %v536_v56 = vmul.f32 %v1518_v45, %v529_v49 }
 0x113   : > { %v518_v44 = vld [vmem:[#allocation3 + $0xe] sm:$0xff]  ;;  %v514_v46 = vmul.f32 %v1516_v36, %v507_v43 }
 0x114   : > { %v525_v52 = vmul.f32 %v1517_v38, %v518_v44  ;;  %v526_v53 = vadd.f32 %v524_v48, %v515_v47 }
 0x115   : > { %v516_v51 = vadd.f32 %v1515_v37, %v514_v46 }
 0x116   : > { %v537_v57 = vadd.f32 %v535_v54, %v526_v53 }
 0x117   : > { %v527_v55 = vadd.f32 %v525_v52, %v516_v51 }
 0x118   : > { %v548_v61 = vadd.f32 %v546_v58, %v537_v57 }
 0x119   : > { %v538_v59 = vadd.f32 %v536_v56, %v527_v55 }
 0x11a   : > { %v551_v63 = vsub.f32 0.0, %v548_v61 }
 0x11b   : > { %v549_v62 = vadd.f32 %v547_v60, %v538_v59 }
 0x11c   : > { %v553_v1 = vmul.f32 1.442695, %v551_v63 }
 0x11d   : > { %v552_v0 = vsub.f32 0.0, %v549_v62 }
 0x11e   : > { %1736 = vpow2.f32 %v553_v1 }
 0x11f   : > { %v555_v2 = vmul.f32 1.442695, %v552_v0 }
 0x121   : > { %1738 = vpow2.f32 %v555_v2 }
 0x128   : > { %v1737_v3 = vpop.eup %1736 }
 0x129   : > { %v557_v4 = vadd.f32 1.0, %v1737_v3 }
 0x12b   : > { %v1739_v5 = vpop.eup %1738  ;;  %1740 = vrcp.f32 %v557_v4 }
 0x12c   : > { %v558_v6 = vadd.f32 1.0, %v1739_v5 }
 0x12e   : > { %1742 = vrcp.f32 %v558_v6 }
 0x135   : > { %v1741_v7 = vpop.eup %1740 }
 0x136   : > { %v2153_v9 = vmul.f32 %v1741_v7, %v548_v61 }
 0x138   : > { %v1743_v8 = vpop.eup %1742 }
 0x139   : > { %v2155_v10 = vmul.f32 %v1743_v8, %v549_v62 }
 0x13b   : > { %v565_v11 = vpack.c.bf16 %v2155_v10, %v2153_v9 }
 0x13d   : > { %1601 = vmatmul.mubr.bf16.vlgmr.msra.gmra.mrb[4].mxu1 %v565_v11 }
 0x210   : > { %v664_v14 = vpop.f32.mrb[4].mxu1 }
 0x211   : > { %765 = vrot.lane.b32.xlu0 %v664_v14, %s1908_s25  ;;  %v1602_v17 = vpop.f32.mrb[5].mxu1 }
 0x212   : > { %v667_v18 = vpop.f32.mrb[6].mxu1 }
 0x213   : > { %v671_v19 = vpack.c.bf16 %v667_v18, %v664_v14  ;;  %v1603_v20 = vpop.f32.mrb[7].mxu1 }
 0x215   : > { %767 = vrot.lane.b32.xlu0 %v667_v18, %s1908_s25  ;;  %1607 = vmatmul.mubr.msk.bf16.vlgmr.msra.gmra.mrb[0].mxu0 %vm680_vm7, %v671_v19 }
 0x283   : > { %v766_v21 = vpop.permute.xlu0 %765 }
 0x284   : > { %772 = vst.msk [vmem:[#allocation7] sm:$0xff] %vm771_vm8, %v766_v21 }
 0x287   : > { %v768_v23 = vpop.permute.xlu0 %767 }
 0x288   : > { %773 = vst.msk [vmem:[#allocation7 + $0x8] sm:$0xff] %vm771_vm8, %v768_v23 }
 0x2e8   : > { %v722_v30 = vpop.f32.mrb[0].mxu0 }
 0x2e9   : > { %v723_v31 = vadd.f32 %v1528_v29, %v722_v30  ;;  %v1608_v32 = vpop.f32.mrb[1].mxu0 }
 0x2ea   : > { %v725_v34 = vpop.f32.mrb[2].mxu0 }
 0x2eb   : > { %v731_v36 = vmin.f32 %v723_v31, 20.0  ;;  %v726_v37 = vadd.f32 %v1528_v29, %v725_v34  ;;  %v1609_v38 = vpop.f32.mrb[3].mxu0  ;;  %vm729_vm10 = vcmp.gt.f32.partialorder %v723_v31, 20.0 }
 0x2ed   : > { %v733_v39 = vmul.f32 1.442695, %v731_v36  ;;  %v732_v40 = vmin.f32 %v726_v37, 20.0  ;;  %vm730_vm12 = vcmp.gt.f32.partialorder %v726_v37, 20.0 }
 0x2ef   : > { %1744 = vpow2.f32 %v733_v39  ;;  %v735_v41 = vmul.f32 1.442695, %v732_v40 }
 0x2f1   : > { %1746 = vpow2.f32 %v735_v41 }
 0x2f9   : > { %v1745_v42 = vpop.eup %1744 }
 0x2fa   : > { %v737_v43 = vadd.f32 1.0, %v1745_v42  ;;  %v740_v46 = vmul.f32 -0.5, %v1745_v42  ;;  %v743_v49 = vand.u32 2147483647, %v1745_v42 }
 0x2fb   : > { %v1747_v44 = vpop.eup %1746 }
 0x2fc   : > { %1748 = vlog2.f32 %v737_v43  ;;  %v746_v45 = vadd.f32 1.0, %v1747_v44  ;;  %v749_v47 = vmul.f32 -0.5, %v1747_v44  ;;  %v741_v48 = vadd.f32 1.0, %v740_v46 }
 0x2fd   : > { %v752_v52 = vand.u32 2147483647, %v1747_v44  ;;  %vm744_vm9 = vcmp.lt.f32.partialorder %v743_v49, 0.0004427343 }
 0x2fe   : > { %1750 = vlog2.f32 %v746_v45  ;;  %v750_v50 = vadd.f32 1.0, %v749_v47  ;;  %v742_v54 = vmul.f32 %v1745_v42, %v741_v48 }
 0x2ff   : > { %vm753_vm11 = vcmp.lt.f32.partialorder %v752_v52, 0.0004427343 }
 0x300   : > { %v751_v58 = vmul.f32 %v1747_v44, %v750_v50 }
 0x306   : > { %v1749_v51 = vpop.eup %1748 }
 0x307   : > { %v739_v53 = vmul.f32 0.6931472, %v1749_v51 }
 0x308   : > { %v1751_v55 = vpop.eup %1750 }
 0x309   : > { %v745_v56 = vsel %vm744_vm9, %v742_v54, %v739_v53  ;;  %v748_v57 = vmul.f32 0.6931472, %v1751_v55 }
 0x30a   : > { %v755_v59 = vsel %vm729_vm10, %v723_v31, %v745_v56 }
 0x30b   : > { %757 = vst [vmem:[#allocation5] sm:$0xff] %v755_v59  ;;  %v759_v60 = vmul.f32 %v755_v59, %v2153_v9  ;;  %v754_v61 = vsel %vm753_vm11, %v751_v58, %v748_v57 }
 0x30c   : > { %v756_v62 = vsel %vm730_vm12, %v726_v37, %v754_v61 }
 0x30d   : > { %761 = vst [vmem:[#allocation6] sm:$0xff] %v759_v60  ;;  %758 = vst [vmem:[#allocation5 + $0x8] sm:$0xff] %v756_v62  ;;  %v760_v63 = vmul.f32 %v756_v62, %v2155_v10 }
 0x30f   : > { %762 = vst [vmem:[#allocation6 + $0x8] sm:$0xff] %v760_v63 }
 0x310 LB: >> { %v830_v0 = vsub.s32 1, %v2085_v16  ;;  %v810_v1 = vsub.s32 0, %v2085_v16  ;;  %s2187_s22 = sshll.u32 %s1902_s18, 3  ;;  %v2190_v2 = vsub.s32 2, %v2085_v16  ;;  %v2195_v5 = vsub.s32 3, %v2085_v16  ;;  %s800_s18 = sadd.s32 1, %s1902_s18   ;;  %s1902_s18 = sphi %s2179_s18, %s800_s18  }
 0x311   : >> { %s806_s12 = scalar_lea.vmem [#allocation7], %s2187_s22  ;;  %s802_s29 = scalar_lea.vmem [#allocation5], %s2187_s22  ;;  %v2223_v21 = vsub.s32 4, %v2085_v16  ;;  %v2228_v30 = vsub.s32 5, %v2085_v16  ;;  %v2231_v31 = vsub.s32 6, %v2085_v16  ;;  %v2241_v37 = vsub.s32 7, %v2085_v16 }
 0x312   : >> { %v807_v3 = vld [vmem:[%s806_s12] sm:$0xff]  ;;  %s804_s25 = scalar_lea.vmem [#allocation6], %s2187_s22  ;;  %s2477_s28 = scalar_lea.vmem [#allocation4], %s2187_s22 }
 0x313   : >> { %v2197_v6 = vrot.slane %v807_v3, %v830_v0  ;;  %v2201_v8 = vrot.slane %v807_v3, %v810_v1  ;;  %v2206_v12 = vrot.slane %v807_v3, %v2190_v2  ;;  %v2238_v36 = vrot.slane %v807_v3, %v2195_v5  ;;  %p797_p1 = scmp.ge.s32.totalorder %s800_s18, 2  }
 0x314   : >> { %v803_v4 = vld [vmem:[%s802_s29] sm:$0xff]  ;;  %v2264_v48 = vrot.slane %v807_v3, %v2223_v21  ;;  %v2273_v53 = vrot.slane %v807_v3, %v2228_v30  ;;  %v2276_v54 = vrot.slane %v807_v3, %v2231_v31  ;;  %v2290_v62 = vrot.slane %v807_v3, %v2241_v37  ;;  %1610 = vmatprep.subr.bf16.mxu0 (%p797_p1), %v1906_v15  ;;  %v1786_v16 = vld [vmem:[%s2618_s9 + $0x10] sm:$0xff] (%p797_p1)   ;;  %s1560_s12 = sshll.u32 (%p797_p1), %s1886_s17, 2  ;;  %s2632_s17 = sand.u32 (%p797_p1), 1, %s1874_s14  }
 0x315   : >> { %v2199_v7 = vrot.slane %v803_v4, %v830_v0  ;;  %v2203_v11 = vrot.slane %v803_v4, %v810_v1  ;;  %v2209_v13 = vrot.slane %v803_v4, %v2190_v2  ;;  %v2212_v14 = vrot.slane %v803_v4, %v2195_v5  ;;  %1626 = vmatprep.mubr.msk.bf16.mxu0 (%p797_p1), %vm1907_vm1, %v1906_v15  ;;  %s1377_s29 = sadd.s32 (%p797_p1), %s1560_s12, %s2040_s21  ;;  %s2557_s21 = scalar_lea.sflag (%p797_p1), [#allocation9], %s2632_s17 }
 0x316   : >> { %v832_v17 = vmul.f32 %v2099_v22, %v2197_v6  ;;  %v812_v18 = vmul.f32 %v2099_v22, %v2201_v8  ;;  %v833_v19 = vmul.f32 %v2105_v24, %v2197_v6  ;;  %v813_v20 = vmul.f32 %v2105_v24, %v2201_v8  ;;  %v805_v55 = vld [vmem:[%s804_s25] sm:$0xff]  ;;  %s1561_s25 = sshll.u32 (%p797_p1), %s1377_s29, 7  ;;  %s1909_s24 = smov (%p797_p1), [#allocation8]  }
 0x317   : >> { %v853_v32 = vmul.f32 %v2105_v24, %v2206_v12  ;;  %v852_v34 = vmul.f32 %v2099_v22, %v2206_v12  ;;  %v2246_v40 = vrot.slane %v803_v4, %v2223_v21  ;;  %v2249_v41 = vrot.slane %v803_v4, %v2228_v30  ;;  %s2547_s19 = scalar_lea.hbm (%p797_p1), %s2619_s10, %s1561_s25  ;;  %s1804_s18 = sshll.u32 (%p797_p1), %s1909_s24, 4  ;;  %s1805_s18 = int_to_ptr.vmem [resolvable:$false] %s1804_s18 }
 0x318   : >> { %v836_v23 = vsel %vm771_vm8, %v832_v17, 0.0  ;;  %v816_v29 = vsel %vm771_vm8, %v812_v18, 0.0  ;;  %v839_v38 = vsel %vm771_vm8, %v833_v19, 0.0  ;;  %v819_v39 = vsel %vm771_vm8, %v813_v20, 0.0  ;;  %s1806_s22 = scalar_lea.vmem (%p797_p1), %s1805_s18, 512 }
 0x319   : >> { %837 = vadd.xlane.f32.xlu1 %v836_v23  ;;  %817 = vadd.xlane.f32.xlu0 %v816_v29  ;;  %v2252_v42 = vrot.slane %v803_v4, %v2231_v31  ;;  %v2255_v43 = vrot.slane %v803_v4, %v2241_v37  ;;  %v873_v44 = vmul.f32 %v2105_v24, %v2238_v36  ;;  %v859_v45 = vsel %vm771_vm8, %v853_v32, 0.0 }
 0x31a   : >> { %v856_v46 = vsel %vm771_vm8, %v852_v34, 0.0  ;;  %v872_v47 = vmul.f32 %v2099_v22, %v2238_v36  ;;  %v893_v51 = vmul.f32 %v2105_v24, %v2264_v48  ;;  %v892_v52 = vmul.f32 %v2099_v22, %v2264_v48 }
 0x31b   : >> { %v879_v49 = vsel %vm771_vm8, %v873_v44, 0.0  ;;  %v913_v58 = vmul.f32 %v2105_v24, %v2273_v53  ;;  %v912_v59 = vmul.f32 %v2099_v22, %v2273_v53  ;;  %v2285_v60 = vrot.slane %v805_v55, %v830_v0 }
 0x31c   : >> { %v876_v50 = vsel %vm771_vm8, %v872_v47, 0.0  ;;  %v899_v56 = vsel %vm771_vm8, %v893_v51, 0.0  ;;  %v896_v57 = vsel %vm771_vm8, %v892_v52, 0.0  ;;  %v2287_v61 = vrot.slane %v805_v55, %v810_v1 }
 0x31d   : >> { %840 = vadd.xlane.f32.xlu1 %v839_v38  ;;  %820 = vadd.xlane.f32.xlu0 %v819_v39  ;;  %v919_v63 = vsel %vm771_vm8, %v913_v58, 0.0  ;;  %v916_v4 = vsel %vm771_vm8, %v912_v59, 0.0  ;;  %v933_v17 = vmul.f32 %v2105_v24, %v2276_v54  ;;  %v932_v18 = vmul.f32 %v2099_v22, %v2276_v54 }
 0x31e   : >> { %v2299_v0 = vrot.slane %v805_v55, %v2190_v2  ;;  %v953_v19 = vmul.f32 %v2105_v24, %v2290_v62  ;;  %v952_v20 = vmul.f32 %v2099_v22, %v2290_v62  ;;  %v2308_v23 = vrot.slane %v805_v55, %v2195_v5 }
 0x31f   : >> { %v939_v1 = vsel %vm771_vm8, %v933_v17, 0.0  ;;  %v936_v3 = vsel %vm771_vm8, %v932_v18, 0.0  ;;  %v815_v32 = vmul.f32 %v2111_v26, %v2201_v8  ;;  %v814_v34 = vmul.f32 %v2108_v25, %v2201_v8 }
 0x320   : >> { %v959_v29 = vsel %vm771_vm8, %v953_v19, 0.0  ;;  %v956_v2 = vsel %vm771_vm8, %v952_v20, 0.0  ;;  %v2317_v38 = vrot.slane %v805_v55, %v2223_v21  ;;  %v835_v44 = vmul.f32 %v2111_v26, %v2197_v6 }
 0x321   : >> { %860 = vadd.xlane.f32.xlu1 %v859_v45  ;;  %857 = vadd.xlane.f32.xlu0 %v856_v46  ;;  %v825_v39 = vsel %vm771_vm8, %v815_v32, 0.0  ;;  %v822_v5 = vsel %vm771_vm8, %v814_v34, 0.0  ;;  %v834_v45 = vmul.f32 %v2108_v25, %v2197_v6  ;;  %v2326_v46 = vrot.slane %v805_v55, %v2228_v30 }
 0x322   : >> { %v845_v8 = vsel %vm771_vm8, %v835_v44, 0.0  ;;  %v855_v47 = vmul.f32 %v2111_v26, %v2206_v12  ;;  %v875_v51 = vmul.f32 %v2111_v26, %v2238_v36  ;;  %v874_v52 = vmul.f32 %v2108_v25, %v2238_v36 }
 0x323   : >> { %v842_v21 = vsel %vm771_vm8, %v834_v45, 0.0  ;;  %v894_v58 = vmul.f32 %v2108_v25, %v2264_v48  ;;  %v934_v17 = vmul.f32 %v2108_v25, %v2276_v54  ;;  %v1005_v32 = vmul.f32 %v2199_v7, %v2167_v27 }
 0x324   : >> { %v865_v6 = vsel %vm771_vm8, %v855_v47, 0.0  ;;  %v1038_v45 = vmul.f32 %v2209_v13, %v2172_v28  ;;  %v1070_v47 = vmul.f32 %v2212_v14, %v2172_v28 }
 0x325   : >> { %880 = vadd.xlane.f32.xlu1 %v879_v49  ;;  %877 = vadd.xlane.f32.xlu0 %v876_v50  ;;  %v854_v49 = vmul.f32 %v2108_v25, %v2206_v12  ;;  %v2335_v50 = vrot.slane %v805_v55, %v2231_v31  ;;  %v885_v12 = vsel %vm771_vm8, %v875_v51, 0.0  ;;  %v882_v31 = vsel %vm771_vm8, %v874_v52, 0.0 }
 0x326   : >> { %v902_v36 = vsel %vm771_vm8, %v894_v58, 0.0  ;;  %v1102_v52 = vmul.f32 %v2246_v40, %v2172_v28  ;;  %v969_v58 = vld [vmem:[#allocation2 + $0x8] sm:$0xff] }
 0x327   : >> { %v862_v30 = vsel %vm771_vm8, %v854_v49, 0.0  ;;  %v968_v49 = vld [vmem:[#allocation2] sm:$0xff] }
 0x329   : >> { %900 = vadd.xlane.f32.xlu1 %v899_v56  ;;  %897 = vadd.xlane.f32.xlu0 %v896_v57  ;;  %v2344_v56 = vrot.slane %v805_v55, %v2241_v37  ;;  %v895_v57 = vmul.f32 %v2111_v26, %v2264_v48  ;;  %v915_v37 = vmul.f32 %v2111_v26, %v2273_v53 }
 0x32a   : >> { %v914_v55 = vmul.f32 %v2108_v25, %v2273_v53  ;;  %v935_v48 = vmul.f32 %v2111_v26, %v2276_v54  ;;  %v955_v53 = vmul.f32 %v2111_v26, %v2290_v62  ;;  %v974_v54 = vmul.f32 %v2203_v11, %v2167_v27  ;;  %v1788_v26 = vld [vmem:[%s2618_s9 + $0x20] sm:$0xff] (%p797_p1)  }
 0x32b   : >> { %v905_v59 = vsel %vm771_vm8, %v895_v57, 0.0 }
 0x32c   : >> { %v945_v18 = vsel %vm771_vm8, %v935_v48, 0.0  ;;  %v965_v19 = vsel %vm771_vm8, %v955_v53, 0.0 }
 0x32d   : >> { %920 = vadd.xlane.f32.xlu1 %v919_v63  ;;  %917 = vadd.xlane.f32.xlu0 %v916_v4  ;;  %v925_v63 = vsel %vm771_vm8, %v915_v37, 0.0  ;;  %v922_v4 = vsel %vm771_vm8, %v914_v55, 0.0  ;;  %v1134_v55 = vmul.f32 %v2249_v41, %v2172_v28 }
 0x331   : >> { %940 = vadd.xlane.f32.xlu1 %v939_v1  ;;  %937 = vadd.xlane.f32.xlu0 %v936_v3  ;;  %v942_v1 = vsel %vm771_vm8, %v934_v17, 0.0  ;;  %v954_v3 = vmul.f32 %v2108_v25, %v2290_v62  ;;  %v1006_v62 = vmul.f32 %v2199_v7, %v2172_v28  ;;  %v1787_v25 = vld [vmem:[%s2618_s9 + $0x18] sm:$0xff] (%p797_p1)  }
 0x333   : >> { %v962_v20 = vsel %vm771_vm8, %v954_v3, 0.0  ;;  %v1009_v44 = vmul.f32 1.442695, %v1006_v62 }
 0x335   : >> { %960 = vadd.xlane.f32.xlu1 %v959_v29  ;;  %957 = vadd.xlane.f32.xlu0 %v956_v2  ;;  %v975_v29 = vmul.f32 %v2203_v11, %v2172_v28  ;;  %v976_v2 = vmul.f32 1.442695, %v974_v54  ;;  %v1137_v54 = vmul.f32 1.442695, %v1134_v55 }
 0x337   : >> { %v978_v34 = vmul.f32 1.442695, %v975_v29  ;;  %1752 = vpow2.f32 %v976_v2 }
 0x339   : >> { %826 = vadd.xlane.f32.xlu1 %v825_v39  ;;  %823 = vadd.xlane.f32.xlu0 %v822_v5  ;;  %v1007_v39 = vmul.f32 1.442695, %v1005_v32  ;;  %v1037_v5 = vmul.f32 %v2209_v13, %v2167_v27  ;;  %1754 = vpow2.f32 %v978_v34  ;;  %v1073_v13 = vmul.f32 1.442695, %v1070_v47 }
 0x33a   : >> { %v1166_v32 = vmul.f32 %v2252_v42, %v2172_v28 }
 0x33b   : >> { %1756 = vpow2.f32 %v1007_v39  ;;  %v1039_v11 = vmul.f32 1.442695, %v1037_v5  ;;  %v1197_v5 = vmul.f32 %v2255_v43, %v2167_v27 }
 0x33c   : >> { %1758 = vpow2.f32 %v1009_v44 }
 0x33d   : >> { %846 = vadd.xlane.f32.xlu1 %v845_v8  ;;  %843 = vadd.xlane.f32.xlu0 %v842_v21  ;;  %v1069_v8 = vmul.f32 %v2212_v14, %v2167_v27  ;;  %v1041_v21 = vmul.f32 1.442695, %v1038_v45  ;;  %1760 = vpow2.f32 %v1039_v11  ;;  %v1133_v14 = vmul.f32 %v2249_v41, %v2167_v27 }
 0x33f   : >> { %1762 = vpow2.f32 %v1041_v21 }
 0x341   : >> { %866 = vadd.xlane.f32.xlu1 %v865_v6  ;;  %863 = vadd.xlane.f32.xlu0 %v862_v30  ;;  %v1753_v7 = vpop.eup %1752  ;;  %v1071_v6 = vmul.f32 1.442695, %v1069_v8  ;;  %v1101_v30 = vmul.f32 %v2246_v40, %v2167_v27  ;;  %v1105_v40 = vmul.f32 1.442695, %v1102_v52 }
 0x342   : >> { %v986_v51 = vmul.f32 %v1753_v7, %v968_v49  ;;  %v1169_v7 = vmul.f32 1.442695, %v1166_v32 }
 0x343   : >> { %1764 = vpow2.f32 %v1071_v6 }
 0x344   : >> { %1766 = vpow2.f32 %v1073_v13 }
 0x345   : >> { %886 = vadd.xlane.f32.xlu1 %v885_v12  ;;  %883 = vadd.xlane.f32.xlu0 %v882_v31  ;;  %v1755_v12 = vpop.eup %1754 }
 0x346   : >> { %v1757_v37 = vpop.eup %1756 }
 0x347   : >> { %v1759_v53 = vpop.eup %1758 }
 0x348   : >> { %v1761_v41 = vpop.eup %1760 }
 0x349   : >> { %906 = vadd.xlane.f32.xlu1 %v905_v59  ;;  %903 = vadd.xlane.f32.xlu0 %v902_v36  ;;  %v1103_v59 = vmul.f32 1.442695, %v1101_v30  ;;  %v1198_v30 = vmul.f32 %v2255_v43, %v2172_v28 }
 0x34b   : >> { %1768 = vpow2.f32 %v1103_v59 }
 0x34c   : >> { %1770 = vpow2.f32 %v1105_v40 }
 0x34d   : >> { %926 = vadd.xlane.f32.xlu1 %v925_v63  ;;  %923 = vadd.xlane.f32.xlu0 %v922_v4  ;;  %v987_v63 = vmul.f32 %v1755_v12, %v969_v58 }
 0x351   : >> { %946 = vadd.xlane.f32.xlu1 %v945_v18  ;;  %943 = vadd.xlane.f32.xlu0 %v942_v1  ;;  %v1135_v18 = vmul.f32 1.442695, %v1133_v14  ;;  %v1165_v1 = vmul.f32 %v2252_v42, %v2167_v27  ;;  %v1789_v27 = vld [vmem:[%s2618_s9 + $0x28] sm:$0xff] (%p797_p1)  }
 0x353   : >> { %1772 = vpow2.f32 %v1135_v18  ;;  %v1167_v39 = vmul.f32 1.442695, %v1165_v1 }
 0x354   : >> { %1774 = vpow2.f32 %v1137_v54 }
 0x355   : >> { %966 = vadd.xlane.f32.xlu1 %v965_v19  ;;  %963 = vadd.xlane.f32.xlu0 %v962_v20  ;;  %1776 = vpow2.f32 %v1167_v39 }
 0x356   : >> { %1778 = vpow2.f32 %v1169_v7 }
 0x3a6   : >> { %v838_v31 = vpop.xlane.xlu1 %837  ;;  %v818_v57 = vpop.xlane.xlu0 %817 }
 0x3a7   : >> { %v984_v36 = vmul.f32 %v2287_v61, %v818_v57  ;;  %v1015_v3 = vmul.f32 %v2285_v60, %v838_v31 }
 0x3a9   : >> { %v2397_v4 = vadd.f32 %v986_v51, %v984_v36 }
 0x3aa   : >> { %v841_v48 = vpop.xlane.xlu1 %840  ;;  %v821_v17 = vpop.xlane.xlu0 %820 }
 0x3ab   : >> { %v985_v19 = vmul.f32 %v2287_v61, %v821_v17  ;;  %v1017_v20 = vmul.f32 %v1757_v37, %v2397_v4  ;;  %v1763_v61 = vpop.eup %1762  ;;  %v1016_v44 = vmul.f32 %v2285_v60, %v841_v48  ;;  %v1199_v60 = vmul.f32 1.442695, %v1197_v5 }
 0x3ac   : >> { %v1765_v21 = vpop.eup %1764  ;;  %v1201_v37 = vmul.f32 1.442695, %v1198_v30 }
 0x3ad   : >> { %v2404_v29 = vadd.f32 %v987_v63, %v985_v19  ;;  %v2406_v2 = vadd.f32 %v1017_v20, %v1015_v3  ;;  %v1767_v51 = vpop.eup %1766  ;;  %1780 = vpow2.f32 %v1199_v60 }
 0x3ae   : >> { %v861_v34 = vpop.xlane.xlu1 %860  ;;  %v858_v62 = vpop.xlane.xlu0 %857  ;;  %1782 = vpow2.f32 %v1201_v37 }
 0x3af   : >> { %v1047_v45 = vmul.f32 %v2299_v0, %v858_v62  ;;  %v1018_v11 = vmul.f32 %v1759_v53, %v2404_v29  ;;  %v1049_v8 = vmul.f32 %v1761_v41, %v2406_v2  ;;  %v1048_v13 = vmul.f32 %v2299_v0, %v861_v34  ;;  %v1769_v57 = vpop.eup %1768 }
 0x3b0   : >> { %v1771_v43 = vpop.eup %1770 }
 0x3b1   : >> { %v2416_v47 = vadd.f32 %v1018_v11, %v1016_v44  ;;  %v2418_v42 = vadd.f32 %v1049_v8, %v1047_v45  ;;  %v1773_v48 = vpop.eup %1772 }
 0x3b2   : >> { %v881_v49 = vpop.xlane.xlu1 %880  ;;  %v878_v6 = vpop.xlane.xlu0 %877 }
 0x3b3   : >> { %v1079_v52 = vmul.f32 %v2308_v23, %v878_v6  ;;  %v1050_v12 = vmul.f32 %v1763_v61, %v2416_v47  ;;  %v1081_v31 = vmul.f32 %v1765_v21, %v2418_v42  ;;  %v1080_v55 = vmul.f32 %v2308_v23, %v881_v49  ;;  %v1775_v3 = vpop.eup %1774 }
 0x3b4   : >> { %v1777_v54 = vpop.eup %1776 }
 0x3b5   : >> { %v2426_v58 = vadd.f32 %v1050_v12, %v1048_v13  ;;  %v2428_v59 = vadd.f32 %v1081_v31, %v1079_v52  ;;  %v1779_v5 = vpop.eup %1778 }
 0x3b6   : >> { %v901_v14 = vpop.xlane.xlu1 %900  ;;  %v898_v36 = vpop.xlane.xlu0 %897 }
 0x3b7   : >> { %v1111_v0 = vmul.f32 %v2317_v38, %v898_v36  ;;  %v1082_v63 = vmul.f32 %v1767_v51, %v2426_v58  ;;  %v1113_v40 = vmul.f32 %v1769_v57, %v2428_v59  ;;  %v1112_v19 = vmul.f32 %v2317_v38, %v901_v14  ;;  %v1781_v11 = vpop.eup %1780 }
 0x3b8   : >> { %v1783_v51 = vpop.eup %1782 }
 0x3b9   : >> { %v2434_v17 = vadd.f32 %v1082_v63, %v1080_v55  ;;  %v2436_v18 = vadd.f32 %v1113_v40, %v1111_v0 }
 0x3ba   : >> { %v921_v1 = vpop.xlane.xlu1 %920  ;;  %v918_v53 = vpop.xlane.xlu0 %917 }
 0x3bb   : >> { %v1143_v20 = vmul.f32 %v2326_v46, %v918_v53  ;;  %v1114_v23 = vmul.f32 %v1771_v43, %v2434_v17  ;;  %v1145_v41 = vmul.f32 %v1773_v48, %v2436_v18  ;;  %v1144_v61 = vmul.f32 %v2326_v46, %v921_v1 }
 0x3bd   : >> { %v2442_v32 = vadd.f32 %v1114_v23, %v1112_v19  ;;  %v2444_v34 = vadd.f32 %v1145_v41, %v1143_v20 }
 0x3be   : >> { %v941_v62 = vpop.xlane.xlu1 %940  ;;  %v938_v39 = vpop.xlane.xlu0 %937 }
 0x3bf   : >> { %v1175_v44 = vmul.f32 %v2335_v50, %v938_v39  ;;  %v1146_v38 = vmul.f32 %v1775_v3, %v2442_v32  ;;  %v1177_v45 = vmul.f32 %v1777_v54, %v2444_v34  ;;  %v1176_v6 = vmul.f32 %v2335_v50, %v941_v62 }
 0x3c1   : >> { %v2450_v8 = vadd.f32 %v1146_v38, %v1144_v61  ;;  %v2452_v21 = vadd.f32 %v1177_v45, %v1175_v44 }
 0x3c2   : >> { %v961_v7 = vpop.xlane.xlu1 %960  ;;  %v958_v49 = vpop.xlane.xlu0 %957 }
 0x3c3   : >> { %v1207_v30 = vmul.f32 %v2344_v56, %v958_v49  ;;  %v1178_v60 = vmul.f32 %v1779_v5, %v2450_v8  ;;  %v1209_v46 = vmul.f32 %v1781_v11, %v2452_v21  ;;  %v1208_v57 = vmul.f32 %v2344_v56, %v961_v7 }
 0x3c5   : >> { %v2458_v13 = vadd.f32 %v1178_v60, %v1176_v6  ;;  %v2460_v52 = vadd.f32 %v1209_v46, %v1207_v30 }
 0x3c6   : >> { %v827_v12 = vpop.xlane.xlu1 %826  ;;  %v824_v31 = vpop.xlane.xlu0 %823 }
 0x3c7   : >> { %v991_v14 = vmul.f32 %v2404_v29, %v827_v12  ;;  %v990_v36 = vmul.f32 %v2397_v4, %v824_v31  ;;  %v1210_v50 = vmul.f32 %v1783_v51, %v2458_v13  ;;  %1225 = vst [vmem:[#allocation2] sm:$0xff] %v2460_v52 }
 0x3c9   : >> { %v992_v37 = vadd.f32 %v991_v14, %v990_v36  ;;  %v2467_v43 = vadd.f32 %v1210_v50, %v1208_v57 }
 0x3ca   : >> { %v847_v55 = vpop.xlane.xlu1 %846  ;;  %v844_v0 = vpop.xlane.xlu0 %843 }
 0x3cb   : >> { %v993_v63 = vrot.slane %v992_v37, 4  ;;  %v1022_v40 = vmul.f32 %v2416_v47, %v847_v55  ;;  %v1021_v48 = vmul.f32 %v2406_v2, %v844_v0  ;;  %1226 = vst [vmem:[#allocation2 + $0x8] sm:$0xff] %v2467_v43 }
 0x3cd   : >> { %v994_v56 = vadd.f32 %v993_v63, %v992_v37  ;;  %v1023_v29 = vadd.f32 %v1022_v40, %v1021_v48 }
 0x3ce   : >> { %v867_v1 = vpop.xlane.xlu1 %866  ;;  %v864_v4 = vpop.xlane.xlu0 %863 }
 0x3cf   : >> { %v995_v53 = vrot.slane %v994_v56, 2  ;;  %v1024_v3 = vrot.slane %v1023_v29, 4  ;;  %v1054_v19 = vmul.f32 %v2426_v58, %v867_v1  ;;  %v1053_v20 = vmul.f32 %v2418_v42, %v864_v4 }
 0x3d1   : >> { %v996_v23 = vadd.f32 %v995_v53, %v994_v56  ;;  %v1025_v41 = vadd.f32 %v1024_v3, %v1023_v29  ;;  %v1055_v54 = vadd.f32 %v1054_v19, %v1053_v20 }
 0x3d2   : >> { %v887_v62 = vpop.xlane.xlu1 %886  ;;  %v884_v47 = vpop.xlane.xlu0 %883 }
 0x3d3   : >> { %v997_v39 = vrot.slane %v996_v23, 1  ;;  %v1026_v2 = vrot.slane %v1025_v41, 2  ;;  %v1056_v5 = vrot.slane %v1055_v54, 4  ;;  %v1086_v61 = vmul.f32 %v2434_v17, %v887_v62 }
 0x3d4   : >> { %v1085_v44 = vmul.f32 %v2428_v59, %v884_v47 }
 0x3d5   : >> { %v998_v38 = vadd.f32 %v997_v39, %v996_v23  ;;  %v1027_v45 = vadd.f32 %v1026_v2, %v1025_v41  ;;  %v1057_v11 = vadd.f32 %v1056_v5, %v1055_v54 }
 0x3d6   : >> { %v1087_v7 = vadd.f32 %v1086_v61, %v1085_v44  ;;  %v907_v58 = vpop.xlane.xlu1 %906  ;;  %v904_v49 = vpop.xlane.xlu0 %903 }
 0x3d7   : >> { %1000 = vst [vmem:[%s2477_s28] sm:$0x1] %v998_v38  ;;  %v1028_v42 = vrot.slane %v1027_v45, 1  ;;  %v1058_v6 = vrot.slane %v1057_v11, 2  ;;  %v1118_v30 = vmul.f32 %v2442_v32, %v907_v58  ;;  %v1117_v60 = vmul.f32 %v2436_v18, %v904_v49 }
 0x3d8   : >> { %v1088_v17 = vrot.slane %v1087_v7, 4 }
 0x3d9   : >> { %v1029_v46 = vadd.f32 %v1028_v42, %v1027_v45  ;;  %v1059_v59 = vadd.f32 %v1058_v6, %v1057_v11  ;;  %v1119_v51 = vadd.f32 %v1118_v30, %v1117_v60  ;;  %v1784_v30 = vld [vmem:[%s2618_s9] sm:$0xff] (%p797_p1)   ;;  %v1785_v60 = vld [vmem:[%s2618_s9 + $0x8] sm:$0xff] (%p797_p1)  }
 0x3da   : >> { %v1089_v12 = vadd.f32 %v1088_v17, %v1087_v7  ;;  %v927_v31 = vpop.xlane.xlu1 %926  ;;  %v924_v57 = vpop.xlane.xlu0 %923  ;;  %1611 = vmatpush3.bf16.msra.mxu0 (%p797_p1), %v1784_v30  ;;  %v1240_v17 = vsub.f32 (%p797_p1), 0.0, %v2134_v33 }
 0x3db   : >> { %1536 = vst [vmem:[%s2477_s28 + $0x1] sm:$0x1] %v1029_v46  ;;  %v1060_v14 = vrot.slane %v1059_v59, 1  ;;  %v1120_v36 = vrot.slane %v1119_v51, 4  ;;  %v1150_v50 = vmul.f32 %v2450_v8, %v927_v31  ;;  %v1149_v37 = vmul.f32 %v2444_v34, %v924_v57  ;;  %1612 = vmatprep.subr.bf16.mxu0 (%p797_p1), %v1906_v15  ;;  %v1549_v57 = vld [vmem:[%s2617_s8] ss:$0 sm:$0xff] (%p797_p1) }
 0x3dc   : >> { %v1090_v55 = vrot.slane %v1089_v12, 2  ;;  %v1241_v46 = vsub.f32 (%p797_p1), 0.0, %v2136_v35  ;;  %v1242_v22 = vmul.f32 (%p797_p1), 1.442695, %v1240_v17 }
 0x3dd   : >> { %v1061_v0 = vadd.f32 %v1060_v14, %v1059_v59  ;;  %v1121_v32 = vadd.f32 %v1120_v36, %v1119_v51  ;;  %v1151_v63 = vadd.f32 %v1150_v50, %v1149_v37  ;;  %v1791_v14 = vld [vmem:[%s2618_s9 + $0x38] sm:$0xff] (%p797_p1)   ;;  %v1236_v36 = vmul.f32 (%p797_p1), %v1549_v57, %v2153_v9 }
 0x3de   : >> { %v1091_v18 = vadd.f32 %v1090_v55, %v1089_v12  ;;  %v947_v40 = vpop.xlane.xlu1 %946  ;;  %v944_v48 = vpop.xlane.xlu0 %943  ;;  %1613 = vmatpush3.bf16.msra.mxu0 (%p797_p1), %v1785_v60  ;;  %v1244_v24 = vmul.f32 (%p797_p1), 1.442695, %v1241_v46  ;;  %1792 = vpow2.f32 (%p797_p1), %v1242_v22  ;;  %v1790_v12 = vld [vmem:[%s2618_s9 + $0x30] sm:$0xff] (%p797_p1)   ;;  %v1237_v37 = vmul.f32 (%p797_p1), %v1549_v57, %v2155_v10 }
 0x3df   : >> { %1538 = vst [vmem:[%s2477_s28 + $0x2] sm:$0x1] %v1061_v0  ;;  %v1122_v56 = vrot.slane %v1121_v32, 2  ;;  %v1152_v29 = vrot.slane %v1151_v63, 4  ;;  %v1182_v1 = vmul.f32 %v2458_v13, %v947_v40  ;;  %v1181_v4 = vmul.f32 %v2452_v21, %v944_v48  ;;  %1614 = vmatprep.subr.bf16.mxu0 (%p797_p1), %v1906_v15 }
 0x3e0   : >> { %v1092_v53 = vrot.slane %v1091_v18, 1  ;;  %1794 = vpow2.f32 (%p797_p1), %v1244_v24 }
 0x3e1   : >> { %v1123_v3 = vadd.f32 %v1122_v56, %v1121_v32  ;;  %v1153_v8 = vadd.f32 %v1152_v29, %v1151_v63  ;;  %v1183_v34 = vadd.f32 %v1182_v1, %v1181_v4 }
 0x3e2   : >> { %v1093_v19 = vadd.f32 %v1092_v53, %v1091_v18  ;;  %v967_v20 = vpop.xlane.xlu1 %966  ;;  %v964_v23 = vpop.xlane.xlu0 %963  ;;  %1615 = vmatpush3.bf16.msra.mxu0 (%p797_p1), %v1786_v16 }
 0x3e3   : >> { %v1124_v41 = vrot.slane %v1123_v3, 1  ;;  %v1154_v54 = vrot.slane %v1153_v8, 2  ;;  %v1184_v62 = vrot.slane %v1183_v34, 4  ;;  %v1214_v47 = vmul.f32 %v2467_v43, %v967_v20  ;;  %1616 = vmatprep.subr.bf16.mxu0 (%p797_p1), %v1906_v15 }
 0x3e4   : >> { %1540 = vst [vmem:[%s2477_s28 + $0x3] sm:$0x1] %v1093_v19  ;;  %v1213_v39 = vmul.f32 %v2460_v52, %v964_v23 }
 0x3e5   : >> { %v1125_v13 = vadd.f32 %v1124_v41, %v1123_v3  ;;  %v1155_v21 = vadd.f32 %v1154_v54, %v1153_v8  ;;  %v1185_v2 = vadd.f32 %v1184_v62, %v1183_v34 }
 0x3e6   : >> { %v1215_v5 = vadd.f32 %v1214_v47, %v1213_v39  ;;  %1617 = vmatpush3.bf16.msra.mxu0 (%p797_p1), %v1787_v25 }
 0x3e7   : >> { %1542 = vst [vmem:[%s2477_s28 + $0x4] sm:$0x1] %v1125_v13  ;;  %v1156_v61 = vrot.slane %v1155_v21, 1  ;;  %v1186_v44 = vrot.slane %v1185_v2, 2  ;;  %1618 = vmatprep.subr.bf16.mxu0 (%p797_p1), %v1906_v15 }
 0x3e8   : >> { %v1216_v38 = vrot.slane %v1215_v5, 4  ;;  %v1793_v28 = vpop.eup (%p797_p1), %1792 }
 0x3e9   : >> { %v1157_v45 = vadd.f32 %v1156_v61, %v1155_v21  ;;  %v1187_v11 = vadd.f32 %v1186_v44, %v1185_v2  ;;  %v1246_v51 = vadd.f32 (%p797_p1), 1.0, %v1793_v28 }
 0x3ea   : >> { %v1217_v7 = vadd.f32 %v1216_v38, %v1215_v5  ;;  %1619 = vmatpush3.bf16.msra.mxu0 (%p797_p1), %v1788_v26  ;;  %v1795_v59 = vpop.eup (%p797_p1), %1794 }
 0x3eb   : >> { %1544 = vst [vmem:[%s2477_s28 + $0x5] sm:$0x1] %v1157_v45  ;;  %v1188_v58 = vrot.slane %v1187_v11, 1  ;;  %1620 = vmatprep.subr.bf16.mxu0 (%p797_p1), %v1906_v15  ;;  %v1247_v31 = vadd.f32 (%p797_p1), 1.0, %v1795_v59  ;;  %1796 = vrcp.f32 (%p797_p1), %v1246_v51 }
 0x3ec   : >> { %v1218_v49 = vrot.slane %v1217_v7, 2 }
 0x3ed   : >> { %v1189_v43 = vadd.f32 %v1188_v58, %v1187_v11  ;;  %1798 = vrcp.f32 (%p797_p1), %v1247_v31 }
 0x3ee   : >> { %v1219_v42 = vadd.f32 %v1218_v49, %v1217_v7  ;;  %799 = sbr.rel (!%p797_p1) target bundleno = 784 (0x310), region = 117  ;;  %1621 = vmatpush3.bf16.msra.mxu0 (%p797_p1), %v1789_v27 }
 0x3ef   : >> { %1546 = vst [vmem:[%s2477_s28 + $0x6] sm:$0x1] %v1189_v43  ;;  %1622 = vmatprep.subr.bf16.mxu0 (%p797_p1), %v1906_v15 }
 0x3f0   : >> { %v1220_v52 = vrot.slane %v1219_v42, 1 }
 0x3f2   : >> { %v1221_v6 = vadd.f32 %v1220_v52, %v1219_v42  ;;  %1623 = vmatpush3.bf16.msra.mxu0 (%p797_p1), %v1790_v12 }
 0x3f3   : > { %1624 = vmatprep.subr.bf16.mxu0 (%p797_p1), %v1906_v15 }
 0x3f4   : >> { %1548 = vst [vmem:[%s2477_s28 + $0x7] sm:$0x1] %v1221_v6  ;;  %s1380_s28 = sshll.u32 (%p797_p1), %s2051_s11, 4  ;;  %s2549_s28 = int_to_ptr.vmem [resolvable:$true] %s1380_s28 }
 0x3f5   : > { %v1797_v32 = vpop.eup %1796  ;;  %s1800_s23 = scalar_lea.vmem %s2549_s28, 256  ;;  %p1807_p6 = scmp.lt.s32.totalorder %s2549_s28, %s1805_s18 }
 0x3f6   : > { %1625 = vmatpush3.bf16.msra.mxu0 %v1791_v14  ;;  %v1252_v40 = vmul.f32 %v1797_v32, %v2134_v33  ;;  %p1801_p2 = scmp.ne.s32.totalorder %s2549_s28, %s1800_s23  ;;  %p1808_p7 = scmp.lt.s32.totalorder %s1806_s22, %s1800_s23 }
 0x3f7   : > { %v1799_v18 = vpop.eup %1798 }
 0x3f8   : > { %v1253_v15 = vmul.f32 %v1799_v18, %v2136_v35  ;;  %p1802_p4 = pnand %p1801_p2, %p2018_p3  ;;  %p1809_p9 = por %p1808_p7, %p1807_p6 }
 0x3fa   : > { %p1803_p5 = pneg %p1802_p4 }
 0x3fb   : > { %v1227_v50 = vld [vmem:[#allocation4] sm:$0xff]  ;;  %v1228_v55 = vld [vmem:[#allocation4 + $0x8] sm:$0xff] }
 0x3fc   : > { %v1238_v0 = vadd.f32 %v1236_v36, %v1227_v50  ;;  %v1239_v63 = vadd.f32 %v1237_v37, %v1228_v55  ;;  %p1810_p10 = pnand %p1809_p9, %p1803_p5 }
 0x3fe   : > { %v1254_v48 = vmul.f32 %v1252_v40, %v1238_v0  ;;  %v1255_v9 = vmul.f32 %v1253_v15, %v1239_v63 }
 0x400   : > { %v1256_v56 = vpack.c.bf16 %v1255_v9, %v1254_v48 }
 0x402   : > { %1627 = vmatmul.mubr.bf16.vlgmr.msra.gmra.mrb[4].mxu0 %v1256_v56 }
 0x4d5   : > { %v1355_v10 = vpop.f32.mrb[4].mxu0 }
 0x4d6   : > { %1362 = vst.msk [vmem:[%s2051_s11] sm:$0xff] %vm450_vm0, %v1355_v10  ;;  %v1628_v33 = vpop.f32.mrb[5].mxu0 }
 0x4d7   : > { %v1358_v35 = vpop.f32.mrb[6].mxu0 }
 0x4d8   : > { %1363 = vst.msk [vmem:[%s2051_s11 + $0x8] sm:$0xff] %vm450_vm0, %v1358_v35  ;;  %v1629_v29 = vpop.f32.mrb[7].mxu0 }
 0x4d9   : > { %1813 = shalt.err (!%p1810_p10)
}
 0x4da   : > { %s1814_s11 = scalar_lea.hbm %s2547_s19, 256  ;;  %s1818_s25 = scalar_lea.hbm %s2619_s10, 1024 }
 0x4db   : > { %p1815_p11 = scmp.ne.s32.totalorder %s2547_s19, %s1814_s11  ;;  %p1819_p0 = scmp.lt.u32.totalorder %s2547_s19, %s2619_s10 }
 0x4dc   : > { %p1820_p1 = scmp.lt.u32.totalorder %s1818_s25, %s1814_s11  ;;  %p1822_p4 = scmp.lt.u32.totalorder %s1814_s11, %s2547_s19 }
 0x4dd   : > { %p1816_p12 = pnand %p1815_p11, %p2018_p3 }
 0x4de   : > { %p1821_p2 = por %p1820_p1, %p1819_p0 }
 0x4df   : > { %p1817_p13 = pneg %p1816_p12 }
 0x4e0   : > { %p1823_p5 = por %p1822_p4, %p1821_p2 }
 0x4e2   : > { %p1824_p6 = pnand %p1823_p5, %p1817_p13 }
 0x4e4   : > { %1827 = shalt.err (!%p1824_p6)
}
 0x4e5   : > { %s1910_s17 = smov 128   ;;  %s1911_s23 = smov 8  }
 0x4e6   : > { %1630 = dma.vmem_to_hbm [thread:$0]  (%p2018_p3), %s2549_s28, 256, %s2547_s19, %s2557_s21, %s1910_s17, %s1910_s17, %s1911_s23  }
 0x4e7 PF: > { %p1636_p7 = scmp.ge.s32.totalorder %s1898_s20, 2  ;;  %s1395_s24 = sand.u32 1, %s1870_s13  }
 0x4e8   : > { %s1396_s18 = scalar_lea.sflag [#allocation9], %s1395_s24 }
 0x4e9   : > { %p1633_p9 = pnand %p1636_p7, %p2027_p8 }
 0x4eb   : > { %1865 = dma.done.wait (!%p1633_p9), %s1396_s18, 256  }
 0x4ec   : > { %1867 = vsyncadd (!%p1633_p9), %s1396_s18, 4294967040  ;;  %s23_s20 = sadd.s32 1, %s1898_s20   ;;  %s2633_s22 = sld [smem:[#allocation15_spill]] }
 0x4ed   : > { %p20_p10 = scmp.ge.s32.totalorder %s23_s20, 6   ;;  %s2634_s16 = sld [smem:[#allocation11_spill]] }
 0x4ee   : > { %s2635_s17 = sld [smem:[#allocation12_spill]]  ;;  %s2636_s18 = sld [smem:[#allocation13_spill]] }
 0x4ef   : > { %s2637_s19 = sld [smem:[#allocation14_spill]]  ;;  %s2638_s13 = smov %s1874_s14 }
 0x4f0   : > { %s2639_s14 = smov %s1878_s15  ;;  %22 = sbr.rel (!%p20_p10) target bundleno = 5 (0x5), region = 128 }
 0x4f2   : > { %s2640_s15 = smov %s2633_s22 }
 0x4f7   :  { %1401 = vsyncpa [#allocation9], 1 }
 0x4f8   :  { %1403 = vsyncpa [#allocation9 + $0x1], 1 }

</bundles_post_ra>
